<compile_context>
chip_gen: v6e
topology: v6e:2x2x1
jax: 0.10.0
libtpu: 0.0.40
codegen_flags: <defaults>
</compile_context>

<pallas_src>
import functools

import jax
import jax.numpy as jnp
from jax import lax
from jax.experimental import pallas as pl
from jax.experimental.pallas import tpu as pltpu


# Architecture constants fixed by the PyTorch module: (out_channels, kernel, stride)
CONV_CFG = ((32, 8, 4), (64, 4, 2), (64, 3, 1))
HEAD_HIDDEN = 1024            # 512 (value stream) + 512 (advantage stream), fused
MAX_M_TILE = 512
HEAD_MAX_K_TILE = 1024        # per-step resident w1 K-chunk (bf16: 2 MiB)
VMEM_LIMIT = 32 * 1024 * 1024  # well under v5e/v6e 128 MiB and v7x 64 MiB physical


# ----------------------------------------------------------------------------
# Padding / tiling helpers (static, trace-time only)
# ----------------------------------------------------------------------------
def _round_up(x, m):
    return (x + m - 1) // m * m


def _choose_m(m):
    """Return (M_pad, tm) with tm | M_pad, tm a multiple of 16, tm <= MAX_M_TILE."""
    mr = _round_up(m, 16)
    if mr <= MAX_M_TILE:
        return mr, mr
    return _round_up(m, MAX_M_TILE), MAX_M_TILE


def _pad2d(x, rows, cols):
    r, c = x.shape
    if (r, c) == (rows, cols):
        return x
    return jnp.pad(x, ((0, rows - r), (0, cols - c)))


# ----------------------------------------------------------------------------
# Conv-as-matmul kernel: single K block (K <= 640 always), bias + ReLU epilogue
# ----------------------------------------------------------------------------
def _conv_matmul_kernel(p_ref, w_ref, b_ref, o_ref):
    acc = jnp.dot(p_ref[...], w_ref[...], preferred_element_type=jnp.float32)
    o_ref[...] = jnp.maximum(acc + b_ref[...], 0.0).astype(o_ref.dtype)


def pallas_conv_matmul(patches, w_p, b_p):
    """patches:(M,K) bf16, w_p:(K_pad,N_pad) bf16, b_p:(1,N_pad) f32 -> (M_pad,N_pad) bf16."""
    M, K = patches.shape
    K_pad, N_pad = w_p.shape
    M_pad, tm = _choose_m(M)
    tn = 128                                            # N_pad is a multiple of 128

    p = _pad2d(patches, M_pad, K_pad)
    grid = (M_pad // tm, N_pad // tn)
    return pl.pallas_call(
        _conv_matmul_kernel,
        out_shape=jax.ShapeDtypeStruct((M_pad, N_pad), jnp.bfloat16),
        grid=grid,
        in_specs=[
            pl.BlockSpec((tm, K_pad), lambda i, j: (i, 0)),
            pl.BlockSpec((K_pad, tn), lambda i, j: (0, j)),
            pl.BlockSpec((1, tn), lambda i, j: (0, j)),
        ],
        out_specs=pl.BlockSpec((tm, tn), lambda i, j: (i, j)),
        compiler_params=pltpu.CompilerParams(
            dimension_semantics=("parallel", "parallel"),
            vmem_limit_bytes=VMEM_LIMIT),
        cost_estimate=pl.CostEstimate(
            flops=2 * M_pad * N_pad * K_pad,
            transcendentals=0,
            bytes_accessed=(2 * M_pad * K_pad + 2 * K_pad * N_pad
                            + 4 * N_pad + 2 * M_pad * N_pad)),
    )(p, w_p, b_p)


# ----------------------------------------------------------------------------
# Fused FC1([v1|a1]) + dueling head kernel (single pallas_call)
# ----------------------------------------------------------------------------
def _fused_head_kernel(x_ref, w1_ref, b1_ref, w2_ref, b2_ref, o_ref, acc_ref, *,
                       batch, num_actions):
    k = pl.program_id(0)

    @pl.when(k == 0)
    def _():
        acc_ref[...] = jnp.zeros_like(acc_ref)

    acc_ref[...] += jnp.dot(x_ref[...], w1_ref[...],
                            preferred_element_type=jnp.float32)

    @pl.when(k == pl.num_programs(0) - 1)
    def _():
        h = jnp.maximum(acc_ref[...] + b1_ref[...], 0.0).astype(jnp.bfloat16)
        out = jnp.dot(h, w2_ref[...], preferred_element_type=jnp.float32) + b2_ref[...]
        # Dueling combine.  Column 0 is V, columns 1..num_actions are A; the
        # remaining lane-padding columns are exactly zero (w2/b2 zero-padded),
        # so the per-row advantage sum is row_total - V.  Mean is over ALL real
        # (batch, action) elements, matching `advantage.mean()` in the reference.
        value = out[:, 0:1]
        row_tot = jnp.sum(out, axis=1, keepdims=True)
        row_ids = lax.broadcasted_iota(jnp.int32, (out.shape[0], 1), 0)
        adv_sum = jnp.sum(jnp.where(row_ids < batch, row_tot - value, 0.0))
        adv_mean = adv_sum * (1.0 / float(batch * num_actions))
        o_ref[...] = value + (out - adv_mean)


def pallas_fused_head(flat, w1_p, b1_p, w2_p, b2_p, *, batch, num_actions):
    """flat:(B,feat) bf16, fused head -> q:(B,num_actions) f32."""
    B, K1 = flat.shape
    K1_pad, H1 = w1_p.shape
    _, N2_pad = w2_p.shape
    B_pad = _round_up(B, 16)
    # TODO(synk): for batch > 1024 the global advantage mean needs a two-pass /
    # grid-accumulated reduction instead of one resident M block.
    assert B_pad <= 1024, "fused dueling head assumes the whole batch fits one M block"
    tk = min(HEAD_MAX_K_TILE, K1_pad)
    assert K1_pad % tk == 0

    flat_p = _pad2d(flat.astype(jnp.bfloat16), B_pad, K1_pad)
    grid = (K1_pad // tk,)
    # TODO(synk): on v7x this single "arbitrary" axis uses one TensorCore; add a
    # parallel M/N split if the batch ever gets large enough to matter.
    out = pl.pallas_call(
        functools.partial(_fused_head_kernel, batch=batch, num_actions=num_actions),
        out_shape=jax.ShapeDtypeStruct((B_pad, N2_pad), jnp.float32),
        grid=grid,
        in_specs=[
            pl.BlockSpec((B_pad, tk), lambda k: (0, k)),
            pl.BlockSpec((tk, H1), lambda k: (k, 0)),
            pl.BlockSpec((1, H1), lambda k: (0, 0)),
            pl.BlockSpec((H1, N2_pad), lambda k: (0, 0)),
            pl.BlockSpec((1, N2_pad), lambda k: (0, 0)),
        ],
        out_specs=pl.BlockSpec((B_pad, N2_pad), lambda k: (0, 0)),
        scratch_shapes=[pltpu.VMEM((B_pad, H1), jnp.float32)],
        compiler_params=pltpu.CompilerParams(
            dimension_semantics=("arbitrary",),
            vmem_limit_bytes=VMEM_LIMIT),
        cost_estimate=pl.CostEstimate(
            flops=2 * B_pad * H1 * K1_pad + 2 * B_pad * H1 * N2_pad,
            transcendentals=0,
            bytes_accessed=(2 * B_pad * K1_pad + 2 * K1_pad * H1 + 4 * H1
                            + 2 * H1 * N2_pad + 4 * N2_pad + 4 * B_pad * N2_pad)),
    )(flat_p, w1_p, b1_p, w2_p, b2_p)
    return out[:batch, 1:1 + num_actions]


# ----------------------------------------------------------------------------
# Gather-free im2col (static strided slices, NHWC, (kh, kw, c) feature order)
# ----------------------------------------------------------------------------
def _extract_patches_nhwc(x, cin, kernel, stride):
    """x:(B,H,W,C>=cin) -> (B*OH*OW, kernel*kernel*cin); channel pad sliced off for free."""
    B, H, W, _ = x.shape
    OH = (H - kernel) // stride + 1
    OW = (W - kernel) // stride + 1
    cols = []
    for i in range(kernel):
        for j in range(kernel):
            cols.append(lax.slice(
                x, (0, i, j, 0),
                (B, i + (OH - 1) * stride + 1, j + (OW - 1) * stride + 1, cin),
                (1, stride, stride, 1)))                 # (B, OH, OW, cin)
    patches = jnp.stack(cols, axis=3)                    # (B, OH, OW, k*k, cin)
    return patches.reshape(B * OH * OW, kernel * kernel * cin), OH, OW


def conv2d_nhwc(x, w_p, b_p, *, cin, kernel, stride):
    """x:(B,H,W,C) bf16 -> (B,OH,OW,N_pad) bf16 (ReLU applied, channels lane-padded)."""
    B = x.shape[0]
    patches, OH, OW = _extract_patches_nhwc(x, cin, kernel, stride)
    out = pallas_conv_matmul(patches, w_p, b_p)
    return out[:B * OH * OW].reshape(B, OH, OW, out.shape[1])


# ----------------------------------------------------------------------------
# One-off weight preparation (hoisted out of the forward pass)
# ----------------------------------------------------------------------------
def prepare_params(params, input_shape):
    """Fuse heads, fold layout into weights, bf16-cast and pad.  Call ONCE."""
    C, H, W = input_shape
    prep = {}

    # Conv weights -> (KH*KW*Cin, Cout) in (kh, kw, c) order (matches NHWC patches).
    for idx, (cout, k, s) in enumerate(CONV_CFG, start=1):
        w = params[f"c{idx}_w"]
        b = params[f"c{idx}_b"]
        co, ci, kh, kw = w.shape
        wmat = jnp.transpose(w, (2, 3, 1, 0)).reshape(kh * kw * ci, co)
        K_pad = _round_up(kh * kw * ci, 128)
        N_pad = _round_up(co, 128)
        prep[f"c{idx}_w"] = _pad2d(wmat.astype(jnp.bfloat16), K_pad, N_pad)
        prep[f"c{idx}_b"] = _pad2d(b.reshape(1, co).astype(jnp.float32), 1, N_pad)

    # Static conv output spatial size.
    oh, ow = H, W
    for _, k, s in CONV_CFG:
        oh = (oh - k) // s + 1
        ow = (ow - k) // s + 1
    c_last = CONV_CFG[-1][0]
    feat = c_last * oh * ow

    # Fused first FC layer of both heads; rows reordered from PyTorch's
    # NCHW-flatten (c, h, w) order to our NHWC-flatten (h, w, c) order.
    def reorder(wm):
        return jnp.transpose(wm.reshape(c_last, oh, ow, wm.shape[1]),
                             (1, 2, 0, 3)).reshape(feat, wm.shape[1])

    w1 = jnp.concatenate([reorder(params["v1_w"]), reorder(params["a1_w"])], axis=1)
    b1 = jnp.concatenate([params["v1_b"], params["a1_b"]], axis=0)
    tk = min(HEAD_MAX_K_TILE, _round_up(feat, 128))
    K1_pad = _round_up(feat, tk)
    prep["w1"] = _pad2d(w1.astype(jnp.bfloat16), K1_pad, HEAD_HIDDEN)
    prep["b1"] = b1.reshape(1, HEAD_HIDDEN).astype(jnp.float32)

    # Fused second FC layer as block-diagonal [v2 ; a2]: column 0 = V, 1..A = advantage.
    num_actions = params["a2_w"].shape[1]
    n2 = 1 + num_actions
    N2_pad = _round_up(n2, 128)
    w2 = jnp.zeros((HEAD_HIDDEN, n2), jnp.float32)
    w2 = w2.at[:512, 0:1].set(params["v2_w"])
    w2 = w2.at[512:, 1:].set(params["a2_w"])
    b2 = jnp.concatenate([params["v2_b"], params["a2_b"]], axis=0)
    prep["w2"] = _pad2d(w2.astype(jnp.bfloat16), HEAD_HIDDEN, N2_pad)
    prep["b2"] = _pad2d(b2.reshape(1, n2).astype(jnp.float32), 1, N2_pad)
    return prep


# ----------------------------------------------------------------------------
# Parameter init (deterministic, PyTorch-default-style uniform(-1/sqrt(fan_in)))
# ----------------------------------------------------------------------------
def _uniform(key, shape, bound):
    return jax.random.uniform(key, shape, jnp.float32, -bound, bound)


def init_dqn_params(key, input_shape, num_actions):
    C, H, W = input_shape
    ks = jax.random.split(key, 14)

    def conv_p(kw_, kb_, cout, cin, k):
        fan_in = cin * k * k
        bd = 1.0 / (fan_in ** 0.5)
        return _uniform(kw_, (cout, cin, k, k), bd), _uniform(kb_, (cout,), bd)

    def lin_p(kw_, kb_, fin, fout):
        bd = 1.0 / (fin ** 0.5)
        return _uniform(kw_, (fin, fout), bd), _uniform(kb_, (fout,), bd)

    p = {}
    p["c1_w"], p["c1_b"] = conv_p(ks[0], ks[1], 32, C, 8)
    p["c2_w"], p["c2_b"] = conv_p(ks[2], ks[3], 64, 32, 4)
    p["c3_w"], p["c3_b"] = conv_p(ks[4], ks[5], 64, 64, 3)

    oh, ow = H, W
    for _, k, s in CONV_CFG:
        oh = (oh - k) // s + 1
        ow = (ow - k) // s + 1
    feat = 64 * oh * ow

    p["v1_w"], p["v1_b"] = lin_p(ks[6], ks[7], feat, 512)
    p["v2_w"], p["v2_b"] = lin_p(ks[8], ks[9], 512, 1)
    p["a1_w"], p["a1_b"] = lin_p(ks[10], ks[11], feat, 512)
    p["a2_w"], p["a2_b"] = lin_p(ks[12], ks[13], 512, num_actions)
    return p


# ----------------------------------------------------------------------------
# Forward pass (DQN.forward semantics)
# ----------------------------------------------------------------------------
def dqn_forward(prep, x, *, num_actions):
    """x: (B, C, H, W) f32 (PyTorch layout) -> q: (B, num_actions) f32."""
    h = jnp.transpose(x, (0, 2, 3, 1)).astype(jnp.bfloat16)   # NCHW -> NHWC, once
    cin = x.shape[1]
    for idx, (cout, k, s) in enumerate(CONV_CFG, start=1):
        h = conv2d_nhwc(h, prep[f"c{idx}_w"], prep[f"c{idx}_b"],
                        cin=cin, kernel=k, stride=s)
        cin = cout

    B, OH, OW, _ = h.shape
    c_last = CONV_CFG[-1][0]
    flat = h[:, :, :, :c_last].reshape(B, OH * OW * c_last)   # NHWC flatten (h, w, c)

    # q = value + (advantage - advantage.mean())  (mean over ALL elements, per spec)
    return pallas_fused_head(flat, prep["w1"], prep["b1"], prep["w2"], prep["b2"],
                             batch=B, num_actions=num_actions)


if __name__ == "__main__":
    # small but conv-chain-consistent shapes: (4, 36, 36) -> 8x8 -> 3x3 -> 1x1, feat=64
    input_shape = (4, 36, 36)
    num_actions = 6
    batch = 2

    key = jax.random.PRNGKey(0)
    pkey, xkey = jax.random.split(key)
    params = init_dqn_params(pkey, input_shape, num_actions)
    prep = prepare_params(params, input_shape)       # one-off weight fusion/cast/pad
    x = jax.random.normal(xkey, (batch,) + input_shape, dtype=jnp.float32)

    fwd = jax.jit(functools.partial(dqn_forward, num_actions=num_actions))
    q_vals = fwd(prep, x)
    jax.block_until_ready(q_vals)
    assert q_vals.shape == (batch, num_actions)
    assert q_vals.dtype == jnp.float32
    print("KERNEL_OK")
</pallas_src>

<mosaic_0001>
module attributes {stable_mosaic.version = 11 : i64} {
  func.func @_conv_matmul_kernel(%arg0: i32, %arg1: i32, %arg2: memref<128x256xbf16, #tpu.memory_space<vmem>>, %arg3: memref<256x128xbf16, #tpu.memory_space<vmem>>, %arg4: memref<1x128xf32, #tpu.memory_space<vmem>>, %arg5: memref<128x128xbf16, #tpu.memory_space<vmem>>) attributes {dimension_semantics = [#tpu.dimension_semantics<parallel>, #tpu.dimension_semantics<parallel>], iteration_bounds = array<i64: 1, 1>, scalar_prefetch = 0 : i64, scratch_operands = 0 : i64, tpu.core_type = #tpu.core_type<tc>, window_params = [{transform_indices = @transform_0, window_bounds = array<i64: 128, 256>}, {transform_indices = @transform_1, window_bounds = array<i64: 256, 128>}, {transform_indices = @transform_2, window_bounds = array<i64: 1, 128>}, {transform_indices = @transform_3, window_bounds = array<i64: 128, 128>}]} {
    %c0 = arith.constant 0 : index
    %c0_0 = arith.constant 0 : index
    %0 = vector.load %arg2[%c0, %c0_0] : memref<128x256xbf16, #tpu.memory_space<vmem>>, vector<128x256xbf16>
    %c0_1 = arith.constant 0 : index
    %c0_2 = arith.constant 0 : index
    %1 = vector.load %arg3[%c0_1, %c0_2] : memref<256x128xbf16, #tpu.memory_space<vmem>>, vector<256x128xbf16>
    %cst = arith.constant dense<0.000000e+00> : vector<128x128xf32>
    %2 = tpu.matmul %0, %1, %cst {dimension_numbers = #tpu.dot_dimension_numbers<[1], [0], [0], [1], [0, 0, 1, 1], [], []>} : vector<128x256xbf16>, vector<256x128xbf16>, vector<128x128xf32> -> vector<128x128xf32>
    %c0_3 = arith.constant 0 : index
    %c0_4 = arith.constant 0 : index
    %3 = vector.load %arg4[%c0_3, %c0_4] : memref<1x128xf32, #tpu.memory_space<vmem>>, vector<1x128xf32>
    %4 = vector.broadcast %3 : vector<1x128xf32> to vector<128x128xf32>
    %5 = arith.addf %2, %4 : vector<128x128xf32>
    %cst_5 = arith.constant 0.000000e+00 : f32
    %6 = vector.broadcast %cst_5 : f32 to vector<128x128xf32>
    %7 = arith.maximumf %5, %6 : vector<128x128xf32>
    %8 = arith.truncf %7 : vector<128x128xf32> to vector<128x128xbf16>
    %c0_6 = arith.constant 0 : index
    %c0_7 = arith.constant 0 : index
    %9 = vector.load %arg5[%c0_6, %c0_7] : memref<128x128xbf16, #tpu.memory_space<vmem>>, vector<128x128xbf16>
    tpu.vector_store %arg5[%c0_6, %c0_7], %8 {strides = array<i32>} : memref<128x128xbf16, #tpu.memory_space<vmem>>, vector<128x128xbf16>,
    return
  }
  func.func @transform_0(%arg0: i32, %arg1: i32) -> (i32, i32) {
    %c0_i32 = arith.constant 0 : i32
    %c0_i32_0 = arith.constant 0 : i32
    return %arg0, %c0_i32 : i32, i32
  }
  func.func @transform_1(%arg0: i32, %arg1: i32) -> (i32, i32) {
    %c0_i32 = arith.constant 0 : i32
    %c0_i32_0 = arith.constant 0 : i32
    return %c0_i32, %arg1 : i32, i32
  }
  func.func @transform_2(%arg0: i32, %arg1: i32) -> (i32, i32) {
    %c0_i32 = arith.constant 0 : i32
    %c0_i32_0 = arith.constant 0 : i32
    return %c0_i32, %arg1 : i32, i32
  }
  func.func @transform_3(%arg0: i32, %arg1: i32) -> (i32, i32) {
    %c0_i32 = arith.constant 0 : i32
    return %arg0, %arg1 : i32, i32
  }
}

module attributes {stable_mosaic.version = 11 : i64} {
  func.func @_conv_matmul_kernel(%arg0: i32, %arg1: i32, %arg2: memref<32x512xbf16, #tpu.memory_space<vmem>>, %arg3: memref<512x128xbf16, #tpu.memory_space<vmem>>, %arg4: memref<1x128xf32, #tpu.memory_space<vmem>>, %arg5: memref<32x128xbf16, #tpu.memory_space<vmem>>) attributes {dimension_semantics = [#tpu.dimension_semantics<parallel>, #tpu.dimension_semantics<parallel>], iteration_bounds = array<i64: 1, 1>, scalar_prefetch = 0 : i64, scratch_operands = 0 : i64, tpu.core_type = #tpu.core_type<tc>, window_params = [{transform_indices = @transform_0, window_bounds = array<i64: 32, 512>}, {transform_indices = @transform_1, window_bounds = array<i64: 512, 128>}, {transform_indices = @transform_2, window_bounds = array<i64: 1, 128>}, {transform_indices = @transform_3, window_bounds = array<i64: 32, 128>}]} {
    %c0 = arith.constant 0 : index
    %c0_0 = arith.constant 0 : index
    %0 = vector.load %arg2[%c0, %c0_0] : memref<32x512xbf16, #tpu.memory_space<vmem>>, vector<32x512xbf16>
    %c0_1 = arith.constant 0 : index
    %c0_2 = arith.constant 0 : index
    %1 = vector.load %arg3[%c0_1, %c0_2] : memref<512x128xbf16, #tpu.memory_space<vmem>>, vector<512x128xbf16>
    %cst = arith.constant dense<0.000000e+00> : vector<32x128xf32>
    %2 = tpu.matmul %0, %1, %cst {dimension_numbers = #tpu.dot_dimension_numbers<[1], [0], [0], [1], [0, 0, 1, 1], [], []>} : vector<32x512xbf16>, vector<512x128xbf16>, vector<32x128xf32> -> vector<32x128xf32>
    %c0_3 = arith.constant 0 : index
    %c0_4 = arith.constant 0 : index
    %3 = vector.load %arg4[%c0_3, %c0_4] : memref<1x128xf32, #tpu.memory_space<vmem>>, vector<1x128xf32>
    %4 = vector.broadcast %3 : vector<1x128xf32> to vector<32x128xf32>
    %5 = arith.addf %2, %4 : vector<32x128xf32>
    %cst_5 = arith.constant 0.000000e+00 : f32
    %6 = vector.broadcast %cst_5 : f32 to vector<32x128xf32>
    %7 = arith.maximumf %5, %6 : vector<32x128xf32>
    %8 = arith.truncf %7 : vector<32x128xf32> to vector<32x128xbf16>
    %c0_6 = arith.constant 0 : index
    %c0_7 = arith.constant 0 : index
    %9 = vector.load %arg5[%c0_6, %c0_7] : memref<32x128xbf16, #tpu.memory_space<vmem>>, vector<32x128xbf16>
    tpu.vector_store %arg5[%c0_6, %c0_7], %8 {strides = array<i32>} : memref<32x128xbf16, #tpu.memory_space<vmem>>, vector<32x128xbf16>,
    return
  }
  func.func @transform_0(%arg0: i32, %arg1: i32) -> (i32, i32) {
    %c0_i32 = arith.constant 0 : i32
    %c0_i32_0 = arith.constant 0 : i32
    return %arg0, %c0_i32 : i32, i32
  }
  func.func @transform_1(%arg0: i32, %arg1: i32) -> (i32, i32) {
    %c0_i32 = arith.constant 0 : i32
    %c0_i32_0 = arith.constant 0 : i32
    return %c0_i32, %arg1 : i32, i32
  }
  func.func @transform_2(%arg0: i32, %arg1: i32) -> (i32, i32) {
    %c0_i32 = arith.constant 0 : i32
    %c0_i32_0 = arith.constant 0 : i32
    return %c0_i32, %arg1 : i32, i32
  }
  func.func @transform_3(%arg0: i32, %arg1: i32) -> (i32, i32) {
    %c0_i32 = arith.constant 0 : i32
    return %arg0, %arg1 : i32, i32
  }
}

module attributes {stable_mosaic.version = 11 : i64} {
  func.func @_conv_matmul_kernel(%arg0: i32, %arg1: i32, %arg2: memref<16x640xbf16, #tpu.memory_space<vmem>>, %arg3: memref<640x128xbf16, #tpu.memory_space<vmem>>, %arg4: memref<1x128xf32, #tpu.memory_space<vmem>>, %arg5: memref<16x128xbf16, #tpu.memory_space<vmem>>) attributes {dimension_semantics = [#tpu.dimension_semantics<parallel>, #tpu.dimension_semantics<parallel>], iteration_bounds = array<i64: 1, 1>, scalar_prefetch = 0 : i64, scratch_operands = 0 : i64, tpu.core_type = #tpu.core_type<tc>, window_params = [{transform_indices = @transform_0, window_bounds = array<i64: 16, 640>}, {transform_indices = @transform_1, window_bounds = array<i64: 640, 128>}, {transform_indices = @transform_2, window_bounds = array<i64: 1, 128>}, {transform_indices = @transform_3, window_bounds = array<i64: 16, 128>}]} {
    %c0 = arith.constant 0 : index
    %c0_0 = arith.constant 0 : index
    %0 = vector.load %arg2[%c0, %c0_0] : memref<16x640xbf16, #tpu.memory_space<vmem>>, vector<16x640xbf16>
    %c0_1 = arith.constant 0 : index
    %c0_2 = arith.constant 0 : index
    %1 = vector.load %arg3[%c0_1, %c0_2] : memref<640x128xbf16, #tpu.memory_space<vmem>>, vector<640x128xbf16>
    %cst = arith.constant dense<0.000000e+00> : vector<16x128xf32>
    %2 = tpu.matmul %0, %1, %cst {dimension_numbers = #tpu.dot_dimension_numbers<[1], [0], [0], [1], [0, 0, 1, 1], [], []>} : vector<16x640xbf16>, vector<640x128xbf16>, vector<16x128xf32> -> vector<16x128xf32>
    %c0_3 = arith.constant 0 : index
    %c0_4 = arith.constant 0 : index
    %3 = vector.load %arg4[%c0_3, %c0_4] : memref<1x128xf32, #tpu.memory_space<vmem>>, vector<1x128xf32>
    %4 = vector.broadcast %3 : vector<1x128xf32> to vector<16x128xf32>
    %5 = arith.addf %2, %4 : vector<16x128xf32>
    %cst_5 = arith.constant 0.000000e+00 : f32
    %6 = vector.broadcast %cst_5 : f32 to vector<16x128xf32>
    %7 = arith.maximumf %5, %6 : vector<16x128xf32>
    %8 = arith.truncf %7 : vector<16x128xf32> to vector<16x128xbf16>
    %c0_6 = arith.constant 0 : index
    %c0_7 = arith.constant 0 : index
    %9 = vector.load %arg5[%c0_6, %c0_7] : memref<16x128xbf16, #tpu.memory_space<vmem>>, vector<16x128xbf16>
    tpu.vector_store %arg5[%c0_6, %c0_7], %8 {strides = array<i32>} : memref<16x128xbf16, #tpu.memory_space<vmem>>, vector<16x128xbf16>,
    return
  }
  func.func @transform_0(%arg0: i32, %arg1: i32) -> (i32, i32) {
    %c0_i32 = arith.constant 0 : i32
    %c0_i32_0 = arith.constant 0 : i32
    return %arg0, %c0_i32 : i32, i32
  }
  func.func @transform_1(%arg0: i32, %arg1: i32) -> (i32, i32) {
    %c0_i32 = arith.constant 0 : i32
    %c0_i32_0 = arith.constant 0 : i32
    return %c0_i32, %arg1 : i32, i32
  }
  func.func @transform_2(%arg0: i32, %arg1: i32) -> (i32, i32) {
    %c0_i32 = arith.constant 0 : i32
    %c0_i32_0 = arith.constant 0 : i32
    return %c0_i32, %arg1 : i32, i32
  }
  func.func @transform_3(%arg0: i32, %arg1: i32) -> (i32, i32) {
    %c0_i32 = arith.constant 0 : i32
    return %arg0, %arg1 : i32, i32
  }
}

module attributes {stable_mosaic.version = 11 : i64} {
  func.func @_fused_head_kernel(%arg0: i32, %arg1: memref<16x128xbf16, #tpu.memory_space<vmem>>, %arg2: memref<128x1024xbf16, #tpu.memory_space<vmem>>, %arg3: memref<1x1024xf32, #tpu.memory_space<vmem>>, %arg4: memref<1024x128xbf16, #tpu.memory_space<vmem>>, %arg5: memref<1x128xf32, #tpu.memory_space<vmem>>, %arg6: memref<16x128xf32, #tpu.memory_space<vmem>>, %arg7: memref<16x1024xf32, #tpu.memory_space<vmem>>) attributes {dimension_semantics = [#tpu.dimension_semantics<arbitrary>], iteration_bounds = array<i64: 1>, scalar_prefetch = 0 : i64, scratch_operands = 1 : i64, tpu.core_type = #tpu.core_type<tc>, window_params = [{transform_indices = @transform_0, window_bounds = array<i64: 16, 128>}, {transform_indices = @transform_1, window_bounds = array<i64: 128, 1024>}, {pipeline_mode = #tpu.pipeline_mode<synchronous>, transform_indices = @transform_2, window_bounds = array<i64: 1, 1024>}, {pipeline_mode = #tpu.pipeline_mode<synchronous>, transform_indices = @transform_3, window_bounds = array<i64: 1024, 128>}, {pipeline_mode = #tpu.pipeline_mode<synchronous>, transform_indices = @transform_4, window_bounds = array<i64: 1, 128>}, {pipeline_mode = #tpu.pipeline_mode<synchronous>, transform_indices = @transform_5, window_bounds = array<i64: 16, 128>}]} {
    %c0_i32 = arith.constant 0 : i32
    %0 = arith.cmpi eq, %arg0, %c0_i32 : i32
    %1 = arith.extui %0 : i1 to i32
    %c0_i32_0 = arith.constant 0 : i32
    %2 = arith.cmpi ne, %1, %c0_i32_0 : i32
    scf.if %2 {
      %cst_10 = arith.constant 0.000000e+00 : f32
      %12 = vector.broadcast %cst_10 : f32 to vector<16x1024xf32>
      %c0_11 = arith.constant 0 : index
      %c0_12 = arith.constant 0 : index
      %13 = vector.load %arg7[%c0_11, %c0_12] : memref<16x1024xf32, #tpu.memory_space<vmem>>, vector<16x1024xf32>
      tpu.vector_store %arg7[%c0_11, %c0_12], %12 {strides = array<i32>} : memref<16x1024xf32, #tpu.memory_space<vmem>>, vector<16x1024xf32>,
    } else {
    }
    %c0 = arith.constant 0 : index
    %c0_1 = arith.constant 0 : index
    %3 = vector.load %arg7[%c0, %c0_1] : memref<16x1024xf32, #tpu.memory_space<vmem>>, vector<16x1024xf32>
    %c0_2 = arith.constant 0 : index
    %c0_3 = arith.constant 0 : index
    %4 = vector.load %arg1[%c0_2, %c0_3] : memref<16x128xbf16, #tpu.memory_space<vmem>>, vector<16x128xbf16>
    %c0_4 = arith.constant 0 : index
    %c0_5 = arith.constant 0 : index
    %5 = vector.load %arg2[%c0_4, %c0_5] : memref<128x1024xbf16, #tpu.memory_space<vmem>>, vector<128x1024xbf16>
    %cst = arith.constant dense<0.000000e+00> : vector<16x1024xf32>
    %6 = tpu.matmul %4, %5, %cst {dimension_numbers = #tpu.dot_dimension_numbers<[1], [0], [0], [1], [0, 0, 1, 1], [], []>} : vector<16x128xbf16>, vector<128x1024xbf16>, vector<16x1024xf32> -> vector<16x1024xf32>
    %7 = arith.addf %3, %6 : vector<16x1024xf32>
    %c0_6 = arith.constant 0 : index
    %c0_7 = arith.constant 0 : index
    %8 = vector.load %arg7[%c0_6, %c0_7] : memref<16x1024xf32, #tpu.memory_space<vmem>>, vector<16x1024xf32>
    tpu.vector_store %arg7[%c0_6, %c0_7], %7 {strides = array<i32>} : memref<16x1024xf32, #tpu.memory_space<vmem>>, vector<16x1024xf32>,
    %c0_i32_8 = arith.constant 0 : i32
    %9 = arith.cmpi eq, %arg0, %c0_i32_8 : i32
    %10 = arith.extui %9 : i1 to i32
    %c0_i32_9 = arith.constant 0 : i32
    %11 = arith.cmpi ne, %10, %c0_i32_9 : i32
    scf.if %11 {
      %c0_10 = arith.constant 0 : index
      %c0_11 = arith.constant 0 : index
      %12 = vector.load %arg7[%c0_10, %c0_11] : memref<16x1024xf32, #tpu.memory_space<vmem>>, vector<16x1024xf32>
      %c0_12 = arith.constant 0 : index
      %c0_13 = arith.constant 0 : index
      %13 = vector.load %arg3[%c0_12, %c0_13] : memref<1x1024xf32, #tpu.memory_space<vmem>>, vector<1x1024xf32>
      %14 = vector.broadcast %13 : vector<1x1024xf32> to vector<16x1024xf32>
      %15 = arith.addf %12, %14 : vector<16x1024xf32>
      %cst_14 = arith.constant 0.000000e+00 : f32
      %16 = vector.broadcast %cst_14 : f32 to vector<16x1024xf32>
      %17 = arith.maximumf %15, %16 : vector<16x1024xf32>
      %18 = arith.truncf %17 : vector<16x1024xf32> to vector<16x1024xbf16>
      %c0_15 = arith.constant 0 : index
      %c0_16 = arith.constant 0 : index
      %19 = vector.load %arg4[%c0_15, %c0_16] : memref<1024x128xbf16, #tpu.memory_space<vmem>>, vector<1024x128xbf16>
      %cst_17 = arith.constant dense<0.000000e+00> : vector<16x128xf32>
      %20 = tpu.matmul %18, %19, %cst_17 {dimension_numbers = #tpu.dot_dimension_numbers<[1], [0], [0], [1], [0, 0, 1, 1], [], []>} : vector<16x1024xbf16>, vector<1024x128xbf16>, vector<16x128xf32> -> vector<16x128xf32>
      %c0_18 = arith.constant 0 : index
      %c0_19 = arith.constant 0 : index
      %21 = vector.load %arg5[%c0_18, %c0_19] : memref<1x128xf32, #tpu.memory_space<vmem>>, vector<1x128xf32>
      %22 = vector.broadcast %21 : vector<1x128xf32> to vector<16x128xf32>
      %23 = arith.addf %20, %22 : vector<16x128xf32>
      %24 = vector.extract_strided_slice %23 {offsets = [0, 0], sizes = [16, 1], strides = [1, 1]} : vector<16x128xf32> to vector<16x1xf32>
      %cst_20 = arith.constant dense<0.000000e+00> : vector<16xf32>
      %25 = vector.multi_reduction <add>, %23, %cst_20 [1] : vector<16x128xf32> to vector<16xf32>
      %26 = vector.shape_cast %25 : vector<16xf32> to vector<16x1xf32>
      %27 = tpu.iota {dimensions = array<i32: 0>} : vector<16x1xi32>
      %c2_i32 = arith.constant 2 : i32
      %28 = vector.broadcast %c2_i32 : i32 to vector<16x1xi32>
      %29 = arith.cmpi slt, %27, %28 : vector<16x1xi32>
      %30 = arith.subf %26, %24 : vector<16x1xf32>
      %cst_21 = arith.constant 0.000000e+00 : f32
      %31 = vector.broadcast %cst_21 : f32 to vector<16x1xf32>
      %32 = arith.select %29, %30, %31 : vector<16x1xi1>, vector<16x1xf32>
      %33 = vector.shape_cast %32 : vector<16x1xf32> to vector<1x16x1xf32>
      %cst_22 = arith.constant dense<0.000000e+00> : vector<1xf32>
      %34 = vector.multi_reduction <add>, %33, %cst_22 [1, 2] : vector<1x16x1xf32> to vector<1xf32>
      %35 = vector.shape_cast %34 : vector<1xf32> to vector<1x1x1xf32>
      %36 = vector.extract %35[0, 0, 0] : f32 from vector<1x1x1xf32>
      %cst_23 = arith.constant 0.0833333358 : f32
      %37 = arith.mulf %36, %cst_23 : f32
      %38 = vector.broadcast %37 : f32 to vector<16x128xf32>
      %39 = arith.subf %23, %38 : vector<16x128xf32>
      %40 = vector.broadcast %24 : vector<16x1xf32> to vector<16x128xf32>
      %41 = arith.addf %40, %39 : vector<16x128xf32>
      %c0_24 = arith.constant 0 : index
      %c0_25 = arith.constant 0 : index
      %42 = vector.load %arg6[%c0_24, %c0_25] : memref<16x128xf32, #tpu.memory_space<vmem>>, vector<16x128xf32>
      tpu.vector_store %arg6[%c0_24, %c0_25], %41 {strides = array<i32>} : memref<16x128xf32, #tpu.memory_space<vmem>>, vector<16x128xf32>,
    } else {
    }
    return
  }
  func.func @transform_0(%arg0: i32) -> (i32, i32) {
    %c0_i32 = arith.constant 0 : i32
    %c0_i32_0 = arith.constant 0 : i32
    return %c0_i32, %arg0 : i32, i32
  }
  func.func @transform_1(%arg0: i32) -> (i32, i32) {
    %c0_i32 = arith.constant 0 : i32
    %c0_i32_0 = arith.constant 0 : i32
    return %arg0, %c0_i32 : i32, i32
  }
  func.func @transform_2(%arg0: i32) -> (i32, i32) {
    %c0_i32 = arith.constant 0 : i32
    %c0_i32_0 = arith.constant 0 : i32
    %c0_i32_1 = arith.constant 0 : i32
    return %c0_i32, %c0_i32_0 : i32, i32
  }
  func.func @transform_3(%arg0: i32) -> (i32, i32) {
    %c0_i32 = arith.constant 0 : i32
    %c0_i32_0 = arith.constant 0 : i32
    %c0_i32_1 = arith.constant 0 : i32
    return %c0_i32, %c0_i32_0 : i32, i32
  }
  func.func @transform_4(%arg0: i32) -> (i32, i32) {
    %c0_i32 = arith.constant 0 : i32
    %c0_i32_0 = arith.constant 0 : i32
    %c0_i32_1 = arith.constant 0 : i32
    return %c0_i32, %c0_i32_0 : i32, i32
  }
  func.func @transform_5(%arg0: i32) -> (i32, i32) {
    %c0_i32 = arith.constant 0 : i32
    %c0_i32_0 = arith.constant 0 : i32
    %c0_i32_1 = arith.constant 0 : i32
    return %c0_i32, %c0_i32_0 : i32, i32
  }
}

</mosaic_0001>

<bundles_post_ra>
// kernel: dqn_forward.4
= control target key start
LH: loop header
LB: loop body
LE: loop exit
PB: predicated region body
PF: predicated region fallthrough
CT: control target
= control target key end

     0   :  { %s836_s1 = inlined_call_operand.vmem [shape: bf16[256,128], index: 1, kind: input, shape index: {}]   ;;  %s837_s0 = inlined_call_operand.vmem [shape: bf16[128,256], index: 0, kind: input, shape index: {}]   ;;  %s838_s2 = inlined_call_operand.vmem [shape: f32[1,128], index: 2, kind: input, shape index: {}]   ;;  %s839_s3 = inlined_call_operand.vmem [shape: bf16[128,128], index: 3, kind: output, shape index: {}]  }
   0x1   :  { %v635_v0 = vld [vmem:[%s836_s1 + $0x78] sm:$0xff]   ;;  %v637_v2 = vld [vmem:[%s836_s1 + $0x70] sm:$0xff]   ;;  %v639_v4 = vld [vmem:[%s836_s1 + $0x68] sm:$0xff]  }
   0x2   :  { %v636_v1 = vld [vmem:[%s836_s1 + $0x38] sm:$0xff]   ;;  %555 = vmatprep.subr.bf16.mxu0 %v635_v0  ;;  %619 = vmatprep.subr.bf16.mxu1 %v635_v0  ;;  %v638_v3 = vld [vmem:[%s836_s1 + $0x30] sm:$0xff]   ;;  %v640_v5 = vld [vmem:[%s836_s1 + $0x28] sm:$0xff]  }
   0x3   :  { %556 = vmatpush3.bf16.msra.mxu0 %v636_v1  ;;  %627 = vmatpush3.bf16.msra.mxu1 %v636_v1  ;;  %v641_v6 = vld [vmem:[%s836_s1 + $0x60] sm:$0xff]   ;;  %v643_v8 = vld [vmem:[%s836_s1 + $0x58] sm:$0xff]   ;;  %v645_v10 = vld [vmem:[%s836_s1 + $0x50] sm:$0xff]  }
   0x4   :  { %557 = vmatprep.subr.bf16.mxu0 %v637_v2  ;;  %620 = vmatprep.subr.bf16.mxu1 %v637_v2  ;;  %v642_v7 = vld [vmem:[%s836_s1 + $0x20] sm:$0xff]   ;;  %v644_v9 = vld [vmem:[%s836_s1 + $0x18] sm:$0xff]   ;;  %v646_v13 = vld [vmem:[%s836_s1 + $0x10] sm:$0xff]  }
   0x5   :  { %v653_v11 = vld [vmem:[%s837_s0 + $0x4] ss:$8 sps:$4 sm:$0xff]   ;;  %v651_v18 = vld [vmem:[%s837_s0] ss:$8 sps:$4 sm:$0xff]   ;;  %v657_v20 = vld [vmem:[%s837_s0 + $0x14] ss:$8 sps:$4 sm:$0xff]  }
   0x6   :  { %v656_v12 = vld [vmem:[%s837_s0 + $0x44] ss:$8 sps:$4 sm:$0xff]   ;;  %278 = vmatprep.mubr.bf16.mxu0 %v653_v11  ;;  %v654_v19 = vld [vmem:[%s837_s0 + $0x40] ss:$8 sps:$4 sm:$0xff]   ;;  %v659_v21 = vld [vmem:[%s837_s0 + $0x54] ss:$8 sps:$4 sm:$0xff]  }
   0x7   :  { %558 = vmatpush3.bf16.msra.mxu0 %v638_v3  ;;  %628 = vmatpush3.bf16.msra.mxu1 %v638_v3  ;;  %v647_v14 = vld [vmem:[%s836_s1 + $0x48] sm:$0xff]   ;;  %v649_v16 = vld [vmem:[%s836_s1 + $0x40] sm:$0xff]   ;;  %v661_v22 = vld [vmem:[%s837_s0 + $0x10] ss:$8 sps:$4 sm:$0xff]  }
   0x8   :  { %559 = vmatprep.subr.bf16.mxu0 %v639_v4  ;;  %621 = vmatprep.subr.bf16.mxu1 %v639_v4  ;;  %v648_v15 = vld [vmem:[%s836_s1 + $0x8] sm:$0xff]   ;;  %v650_v17 = vld [vmem:[%s836_s1] sm:$0xff]   ;;  %v662_v23 = vld [vmem:[%s837_s0 + $0x50] ss:$8 sps:$4 sm:$0xff]  }
   0x9   :  { %310 = vmatprep.mubr.bf16.mxu1 %v656_v12  ;;  %v663_v24 = vld [vmem:[%s837_s0 + $0x24] ss:$8 sps:$4 sm:$0xff]   ;;  %v667_v26 = vld [vmem:[%s837_s0 + $0x20] ss:$8 sps:$4 sm:$0xff]   ;;  %v669_v28 = vld [vmem:[%s837_s0 + $0x34] ss:$8 sps:$4 sm:$0xff]  }
   0xa   :  { %v665_v25 = vld [vmem:[%s837_s0 + $0x64] ss:$8 sps:$4 sm:$0xff]   ;;  %v668_v27 = vld [vmem:[%s837_s0 + $0x60] ss:$8 sps:$4 sm:$0xff]   ;;  %v671_v29 = vld [vmem:[%s837_s0 + $0x74] ss:$8 sps:$4 sm:$0xff]  }
   0xb   :  { %560 = vmatpush3.bf16.msra.mxu0 %v640_v5  ;;  %629 = vmatpush3.bf16.msra.mxu1 %v640_v5  ;;  %v673_v30 = vld [vmem:[%s837_s0 + $0x30] ss:$8 sps:$4 sm:$0xff]   ;;  %v794_v36 = vld [vmem:[%s838_s2] ss:$0 sm:$0xff] }
   0xc   :  { %561 = vmatprep.subr.bf16.mxu0 %v641_v6  ;;  %622 = vmatprep.subr.bf16.mxu1 %v641_v6  ;;  %v674_v31 = vld [vmem:[%s837_s0 + $0x70] ss:$8 sps:$4 sm:$0xff]  }
   0xf   :  { %562 = vmatpush3.bf16.msra.mxu0 %v642_v7  ;;  %630 = vmatpush3.bf16.msra.mxu1 %v642_v7 }
  0x10   :  { %563 = vmatprep.subr.bf16.mxu0 %v643_v8  ;;  %623 = vmatprep.subr.bf16.mxu1 %v643_v8 }
  0x13   :  { %564 = vmatpush3.bf16.msra.mxu0 %v644_v9  ;;  %631 = vmatpush3.bf16.msra.mxu1 %v644_v9 }
  0x14   :  { %565 = vmatprep.subr.bf16.mxu0 %v645_v10  ;;  %624 = vmatprep.subr.bf16.mxu1 %v645_v10 }
  0x17   :  { %566 = vmatpush3.bf16.msra.mxu0 %v646_v13  ;;  %632 = vmatpush3.bf16.msra.mxu1 %v646_v13 }
  0x18   :  { %567 = vmatprep.subr.bf16.mxu0 %v647_v14  ;;  %625 = vmatprep.subr.bf16.mxu1 %v647_v14 }
  0x1b   :  { %568 = vmatpush3.bf16.msra.mxu0 %v648_v15  ;;  %633 = vmatpush3.bf16.msra.mxu1 %v648_v15 }
  0x1c   :  { %569 = vmatprep.subr.bf16.mxu0 %v649_v16  ;;  %626 = vmatprep.subr.bf16.mxu1 %v649_v16 }
  0x1f   :  { %570 = vmatpush3.bf16.msra.mxu0 %v650_v17  ;;  %634 = vmatpush3.bf16.msra.mxu1 %v650_v17 }
  0x22   :  { %279 = vmatmul.mubr.bf16.vlgmr.msra.gmra.mxu0 %v651_v18  ;;  %311 = vmatmul.mubr.bf16.vlgmr.msra.gmra.mxu1 %v654_v19 }
  0x23   :  { %286 = vmatprep.mubr.bf16.mxu0 %v657_v20  ;;  %318 = vmatprep.mubr.bf16.mxu1 %v659_v21 }
  0x2a   :  { %287 = vmatmul.mubr.bf16.gmra.mxu0 %v661_v22  ;;  %319 = vmatmul.mubr.bf16.gmra.mxu1 %v662_v23 }
  0x2b   :  { %294 = vmatprep.mubr.bf16.mxu0 %v663_v24  ;;  %326 = vmatprep.mubr.bf16.mxu1 %v665_v25 }
  0x32   :  { %295 = vmatmul.mubr.bf16.gmra.mxu0 %v667_v26  ;;  %327 = vmatmul.mubr.bf16.gmra.mxu1 %v668_v27 }
  0x33   :  { %302 = vmatprep.mubr.bf16.mxu0 %v669_v28  ;;  %334 = vmatprep.mubr.bf16.mxu1 %v671_v29 }
  0x3a   :  { %303 = vmatmul.mubr.bf16.gmra.mxu0 %v673_v30  ;;  %335 = vmatmul.mubr.bf16.gmra.mxu1 %v674_v31 }
  0xe2   :  { %v571_v32 = vpop.f32.mrf.mxu0  ;;  %v595_v33 = vpop.f32.mrf.mxu1 }
  0xe4   :  { %v572_v34 = vpop.f32.mrf.mxu0  ;;  %v596_v35 = vpop.f32.mrf.mxu1 }
  0xe5   :  { %v573_v37 = vadd.f32 %v572_v34, %v571_v32  ;;  %v597_v38 = vadd.f32 %v596_v35, %v595_v33 }
  0xe6   :  { %v574_v39 = vpop.f32.mrf.mxu0  ;;  %v598_v40 = vpop.f32.mrf.mxu1 }
  0xe7   :  { %v281_v41 = vadd.f32 %v573_v37, %v794_v36  ;;  %v313_v42 = vadd.f32 %v597_v38, %v794_v36 }
  0xe8   :  { %v575_v43 = vpop.f32.mrf.mxu0  ;;  %v599_v44 = vpop.f32.mrf.mxu1 }
  0xe9   :  { %v576_v45 = vadd.f32 %v575_v43, %v574_v39  ;;  %v600_v46 = vadd.f32 %v599_v44, %v598_v40  ;;  %v343_v51 = vmax.f32 %v281_v41, 0.0  ;;  %v351_v52 = vmax.f32 %v313_v42, 0.0 }
  0xea   :  { %v577_v47 = vpop.f32.mrf.mxu0  ;;  %v601_v48 = vpop.f32.mrf.mxu1 }
  0xeb   :  { %v284_v49 = vadd.f32 %v576_v45, %v794_v36  ;;  %v316_v50 = vadd.f32 %v600_v46, %v794_v36 }
  0xec   :  { %v578_v53 = vpop.f32.mrf.mxu0  ;;  %v602_v54 = vpop.f32.mrf.mxu1 }
  0xed   :  { %v344_v55 = vmax.f32 %v284_v49, 0.0  ;;  %v352_v56 = vmax.f32 %v316_v50, 0.0  ;;  %v579_v57 = vadd.f32 %v578_v53, %v577_v47  ;;  %v603_v58 = vadd.f32 %v602_v54, %v601_v48 }
  0xee   :  { %v580_v59 = vpop.f32.mrf.mxu0  ;;  %v604_v60 = vpop.f32.mrf.mxu1 }
  0xef   :  { %v511_v61 = vpack.c.bf16 %v344_v55, %v343_v51  ;;  %v531_v62 = vpack.c.bf16 %v352_v56, %v351_v52  ;;  %v289_v63 = vadd.f32 %v579_v57, %v794_v36  ;;  %v321_v0 = vadd.f32 %v603_v58, %v794_v36 }
  0xf0   :  { %v581_v1 = vpop.f32.mrf.mxu0  ;;  %v605_v2 = vpop.f32.mrf.mxu1 }
  0xf1   :  { %512 = vst [vmem:[%s839_s3] sm:$0xff] %v511_v61   ;;  %551 = vst [vmem:[%s839_s3 + $0x20] sm:$0xff] %v531_v62   ;;  %v582_v3 = vadd.f32 %v581_v1, %v580_v59  ;;  %v606_v4 = vadd.f32 %v605_v2, %v604_v60  ;;  %v345_v9 = vmax.f32 %v289_v63, 0.0  ;;  %v353_v10 = vmax.f32 %v321_v0, 0.0 }
  0xf2   :  { %v583_v5 = vpop.f32.mrf.mxu0  ;;  %v607_v6 = vpop.f32.mrf.mxu1 }
  0xf3   :  { %v292_v7 = vadd.f32 %v582_v3, %v794_v36  ;;  %v324_v8 = vadd.f32 %v606_v4, %v794_v36 }
  0xf4   :  { %v584_v11 = vpop.f32.mrf.mxu0  ;;  %v608_v12 = vpop.f32.mrf.mxu1 }
  0xf5   :  { %v346_v13 = vmax.f32 %v292_v7, 0.0  ;;  %v354_v14 = vmax.f32 %v324_v8, 0.0  ;;  %v585_v15 = vadd.f32 %v584_v11, %v583_v5  ;;  %v609_v16 = vadd.f32 %v608_v12, %v607_v6 }
  0xf6   :  { %v586_v17 = vpop.f32.mrf.mxu0  ;;  %v610_v18 = vpop.f32.mrf.mxu1 }
  0xf7   :  { %v516_v19 = vpack.c.bf16 %v346_v13, %v345_v9  ;;  %v536_v20 = vpack.c.bf16 %v354_v14, %v353_v10  ;;  %v297_v21 = vadd.f32 %v585_v15, %v794_v36  ;;  %v329_v22 = vadd.f32 %v609_v16, %v794_v36 }
  0xf8   :  { %v587_v23 = vpop.f32.mrf.mxu0  ;;  %v611_v24 = vpop.f32.mrf.mxu1 }
  0xf9   :  { %548 = vst [vmem:[%s839_s3 + $0x8] sm:$0xff] %v516_v19   ;;  %552 = vst [vmem:[%s839_s3 + $0x28] sm:$0xff] %v536_v20   ;;  %v588_v25 = vadd.f32 %v587_v23, %v586_v17  ;;  %v612_v26 = vadd.f32 %v611_v24, %v610_v18  ;;  %v347_v31 = vmax.f32 %v297_v21, 0.0  ;;  %v355_v32 = vmax.f32 %v329_v22, 0.0 }
  0xfa   :  { %v589_v27 = vpop.f32.mrf.mxu0  ;;  %v613_v28 = vpop.f32.mrf.mxu1 }
  0xfb   :  { %v300_v29 = vadd.f32 %v588_v25, %v794_v36  ;;  %v332_v30 = vadd.f32 %v612_v26, %v794_v36 }
  0xfc   :  { %v590_v33 = vpop.f32.mrf.mxu0  ;;  %v614_v34 = vpop.f32.mrf.mxu1 }
  0xfd   :  { %v348_v35 = vmax.f32 %v300_v29, 0.0  ;;  %v356_v37 = vmax.f32 %v332_v30, 0.0  ;;  %v591_v38 = vadd.f32 %v590_v33, %v589_v27  ;;  %v615_v39 = vadd.f32 %v614_v34, %v613_v28 }
  0xfe   :  { %v592_v40 = vpop.f32.mrf.mxu0  ;;  %v616_v41 = vpop.f32.mrf.mxu1 }
  0xff   :  { %v521_v42 = vpack.c.bf16 %v348_v35, %v347_v31  ;;  %v541_v43 = vpack.c.bf16 %v356_v37, %v355_v32  ;;  %v305_v46 = vadd.f32 %v591_v38, %v794_v36  ;;  %v337_v47 = vadd.f32 %v615_v39, %v794_v36 }
 0x100   :  { %v593_v44 = vpop.f32.mrf.mxu0  ;;  %v617_v45 = vpop.f32.mrf.mxu1 }
 0x101   :  { %549 = vst [vmem:[%s839_s3 + $0x10] sm:$0xff] %v521_v42   ;;  %553 = vst [vmem:[%s839_s3 + $0x30] sm:$0xff] %v541_v43   ;;  %v594_v48 = vadd.f32 %v593_v44, %v592_v40  ;;  %v618_v49 = vadd.f32 %v617_v45, %v616_v41  ;;  %v349_v52 = vmax.f32 %v305_v46, 0.0  ;;  %v357_v53 = vmax.f32 %v337_v47, 0.0 }
 0x103   :  { %v308_v50 = vadd.f32 %v594_v48, %v794_v36  ;;  %v340_v51 = vadd.f32 %v618_v49, %v794_v36 }
 0x105   :  { %v350_v54 = vmax.f32 %v308_v50, 0.0  ;;  %v358_v55 = vmax.f32 %v340_v51, 0.0 }
 0x107   :  { %v526_v56 = vpack.c.bf16 %v350_v54, %v349_v52  ;;  %v546_v57 = vpack.c.bf16 %v358_v55, %v357_v53 }
 0x109   :  { %550 = vst [vmem:[%s839_s3 + $0x18] sm:$0xff] %v526_v56   ;;  %554 = vst [vmem:[%s839_s3 + $0x38] sm:$0xff] %v546_v57  }

// kernel: dqn_forward.5
= control target key start
LH: loop header
LB: loop body
LE: loop exit
PB: predicated region body
PF: predicated region fallthrough
CT: control target
= control target key end

     0   :  { %s761_s1 = inlined_call_operand.vmem [shape: bf16[512,128], index: 1, kind: input, shape index: {}]   ;;  %s762_s0 = inlined_call_operand.vmem [shape: bf16[32,512], index: 0, kind: input, shape index: {}]   ;;  %s763_s2 = inlined_call_operand.vmem [shape: f32[1,128], index: 2, kind: input, shape index: {}]   ;;  %s764_s3 = inlined_call_operand.vmem [shape: bf16[32,128], index: 3, kind: output, shape index: {}]  }
   0x1   :  { %v568_v0 = vld [vmem:[%s761_s1 + $0x78] sm:$0xff]   ;;  %v572_v4 = vld [vmem:[%s761_s1 + $0x70] sm:$0xff]   ;;  %v576_v8 = vld [vmem:[%s761_s1 + $0x68] sm:$0xff]  }
   0x2   :  { %v569_v1 = vld [vmem:[%s761_s1 + $0xf8] sm:$0xff]   ;;  %512 = vmatprep.subr.bf16.mxu0 %v568_v0  ;;  %v573_v5 = vld [vmem:[%s761_s1 + $0xf0] sm:$0xff]   ;;  %v577_v9 = vld [vmem:[%s761_s1 + $0xe8] sm:$0xff]  }
   0x3   :  { %v570_v2 = vld [vmem:[%s761_s1 + $0x38] sm:$0xff]   ;;  %540 = vmatprep.subr.bf16.mxu1 %v569_v1  ;;  %v574_v6 = vld [vmem:[%s761_s1 + $0x30] sm:$0xff]   ;;  %v578_v10 = vld [vmem:[%s761_s1 + $0x28] sm:$0xff]  }
   0x4   :  { %v571_v3 = vld [vmem:[%s761_s1 + $0xb8] sm:$0xff]   ;;  %513 = vmatpush3.bf16.msra.mxu0 %v570_v2  ;;  %v575_v7 = vld [vmem:[%s761_s1 + $0xb0] sm:$0xff]   ;;  %v579_v11 = vld [vmem:[%s761_s1 + $0xa8] sm:$0xff]  }
   0x5   :  { %541 = vmatpush3.bf16.msra.mxu1 %v571_v3  ;;  %514 = vmatprep.subr.bf16.mxu0 %v572_v4  ;;  %v580_v12 = vld [vmem:[%s761_s1 + $0x60] sm:$0xff]   ;;  %v584_v16 = vld [vmem:[%s761_s1 + $0x58] sm:$0xff]   ;;  %v588_v20 = vld [vmem:[%s761_s1 + $0x50] sm:$0xff]  }
   0x6   :  { %542 = vmatprep.subr.bf16.mxu1 %v573_v5  ;;  %v581_v13 = vld [vmem:[%s761_s1 + $0xe0] sm:$0xff]   ;;  %v585_v17 = vld [vmem:[%s761_s1 + $0xd8] sm:$0xff]   ;;  %v589_v21 = vld [vmem:[%s761_s1 + $0xd0] sm:$0xff]  }
   0x7   :  { %v582_v14 = vld [vmem:[%s761_s1 + $0x20] sm:$0xff]   ;;  %v586_v18 = vld [vmem:[%s761_s1 + $0x18] sm:$0xff]   ;;  %v590_v22 = vld [vmem:[%s761_s1 + $0x10] sm:$0xff]  }
   0x8   :  { %515 = vmatpush3.bf16.msra.mxu0 %v574_v6  ;;  %v583_v15 = vld [vmem:[%s761_s1 + $0xa0] sm:$0xff]   ;;  %v587_v19 = vld [vmem:[%s761_s1 + $0x98] sm:$0xff]   ;;  %v591_v23 = vld [vmem:[%s761_s1 + $0x90] sm:$0xff]  }
   0x9   :  { %543 = vmatpush3.bf16.msra.mxu1 %v575_v7  ;;  %516 = vmatprep.subr.bf16.mxu0 %v576_v8  ;;  %v592_v24 = vld [vmem:[%s761_s1 + $0x48] sm:$0xff]   ;;  %v596_v28 = vld [vmem:[%s761_s1 + $0x40] sm:$0xff]  }
   0xa   :  { %544 = vmatprep.subr.bf16.mxu1 %v577_v9  ;;  %v593_v25 = vld [vmem:[%s761_s1 + $0xc8] sm:$0xff]   ;;  %v597_v29 = vld [vmem:[%s761_s1 + $0xc0] sm:$0xff]  }
   0xb   :  { %v594_v26 = vld [vmem:[%s761_s1 + $0x8] sm:$0xff]   ;;  %v598_v30 = vld [vmem:[%s761_s1] sm:$0xff]  }
   0xc   :  { %517 = vmatpush3.bf16.msra.mxu0 %v578_v10  ;;  %v595_v27 = vld [vmem:[%s761_s1 + $0x88] sm:$0xff]   ;;  %v599_v31 = vld [vmem:[%s761_s1 + $0x80] sm:$0xff]  }
   0xd   :  { %545 = vmatpush3.bf16.msra.mxu1 %v579_v11  ;;  %518 = vmatprep.subr.bf16.mxu0 %v580_v12  ;;  %v600_v32 = vld [vmem:[%s762_s0] ss:$16 sps:$4 sm:$0xff]   ;;  %v602_v33 = vld [vmem:[%s762_s0 + $0x4] ss:$16 sps:$4 sm:$0xff]   ;;  %v603_v34 = vld [vmem:[%s762_s0 + $0x8] ss:$16 sps:$4 sm:$0xff]  }
   0xe   :  { %546 = vmatprep.subr.bf16.mxu1 %v581_v13  ;;  %v605_v35 = vld [vmem:[%s762_s0 + $0xc] ss:$16 sps:$4 sm:$0xff]   ;;  %358 = vmatprep.mubr.bf16.mxu0 %v602_v33  ;;  %v606_v36 = vld [vmem:[%s762_s0 + $0x24] ss:$16 sps:$4 sm:$0xff]   ;;  %v610_v38 = vld [vmem:[%s762_s0 + $0x20] ss:$16 sps:$4 sm:$0xff]  }
   0xf   :  { %407 = vmatprep.mubr.bf16.mxu1 %v605_v35  ;;  %v608_v37 = vld [vmem:[%s762_s0 + $0x2c] ss:$16 sps:$4 sm:$0xff]   ;;  %v611_v39 = vld [vmem:[%s762_s0 + $0x28] ss:$16 sps:$4 sm:$0xff]   ;;  %v452_v42 = vld [vmem:[%s763_s2] ss:$0 sm:$0xff] }
  0x10   :  { %519 = vmatpush3.bf16.msra.mxu0 %v582_v14 }
  0x11   :  { %547 = vmatpush3.bf16.msra.mxu1 %v583_v15  ;;  %520 = vmatprep.subr.bf16.mxu0 %v584_v16 }
  0x12   :  { %548 = vmatprep.subr.bf16.mxu1 %v585_v17 }
  0x14   :  { %521 = vmatpush3.bf16.msra.mxu0 %v586_v18 }
  0x15   :  { %549 = vmatpush3.bf16.msra.mxu1 %v587_v19  ;;  %522 = vmatprep.subr.bf16.mxu0 %v588_v20 }
  0x16   :  { %550 = vmatprep.subr.bf16.mxu1 %v589_v21 }
  0x18   :  { %523 = vmatpush3.bf16.msra.mxu0 %v590_v22 }
  0x19   :  { %551 = vmatpush3.bf16.msra.mxu1 %v591_v23  ;;  %524 = vmatprep.subr.bf16.mxu0 %v592_v24 }
  0x1a   :  { %552 = vmatprep.subr.bf16.mxu1 %v593_v25 }
  0x1c   :  { %525 = vmatpush3.bf16.msra.mxu0 %v594_v26 }
  0x1d   :  { %553 = vmatpush3.bf16.msra.mxu1 %v595_v27  ;;  %526 = vmatprep.subr.bf16.mxu0 %v596_v28 }
  0x1e   :  { %554 = vmatprep.subr.bf16.mxu1 %v597_v29 }
  0x20   :  { %527 = vmatpush3.bf16.msra.mxu0 %v598_v30 }
  0x21   :  { %555 = vmatpush3.bf16.msra.mxu1 %v599_v31 }
  0x23   :  { %359 = vmatmul.mubr.bf16.vlgmr.msra.gmra.mxu0 %v600_v32 }
  0x24   :  { %408 = vmatmul.mubr.bf16.vlgmr.msra.gmra.mxu1 %v603_v34  ;;  %366 = vmatprep.mubr.bf16.mxu0 %v606_v36 }
  0x25   :  { %415 = vmatprep.mubr.bf16.mxu1 %v608_v37 }
  0x2b   :  { %367 = vmatmul.mubr.bf16.gmra.mxu0 %v610_v38 }
  0x2c   :  { %416 = vmatmul.mubr.bf16.gmra.mxu1 %v611_v39 }
  0xe3   :  { %v528_v40 = vpop.f32.mrf.mxu0 }
  0xe4   :  { %v556_v41 = vpop.f32.mrf.mxu1 }
  0xe5   :  { %v529_v43 = vpop.f32.mrf.mxu0 }
  0xe6   :  { %v530_v44 = vadd.f32 %v529_v43, %v528_v40  ;;  %v557_v45 = vpop.f32.mrf.mxu1 }
  0xe7   :  { %v531_v46 = vpop.f32.mrf.mxu0  ;;  %v558_v50 = vadd.f32 %v557_v45, %v556_v41 }
  0xe8   :  { %v361_v47 = vadd.f32 %v530_v44, %v452_v42  ;;  %v559_v48 = vpop.f32.mrf.mxu1 }
  0xe9   :  { %v532_v49 = vpop.f32.mrf.mxu0 }
  0xea   :  { %v533_v51 = vadd.f32 %v532_v49, %v531_v46  ;;  %v560_v52 = vpop.f32.mrf.mxu1  ;;  %v410_v54 = vadd.f32 %v558_v50, %v361_v47 }
  0xeb   :  { %v534_v53 = vpop.f32.mrf.mxu0  ;;  %v561_v56 = vadd.f32 %v560_v52, %v559_v48 }
  0xec   :  { %v364_v55 = vadd.f32 %v533_v51, %v452_v42  ;;  %v562_v57 = vpop.f32.mrf.mxu1  ;;  %v424_v63 = vmax.f32 %v410_v54, 0.0 }
  0xed   :  { %v535_v58 = vpop.f32.mrf.mxu0 }
  0xee   :  { %v413_v59 = vadd.f32 %v561_v56, %v364_v55  ;;  %v536_v60 = vadd.f32 %v535_v58, %v534_v53  ;;  %v563_v61 = vpop.f32.mrf.mxu1 }
  0xef   :  { %v537_v62 = vpop.f32.mrf.mxu0  ;;  %v564_v5 = vadd.f32 %v563_v61, %v562_v57 }
  0xf0   :  { %v425_v0 = vmax.f32 %v413_v59, 0.0  ;;  %v369_v1 = vadd.f32 %v536_v60, %v452_v42  ;;  %v565_v2 = vpop.f32.mrf.mxu1 }
  0xf1   :  { %v538_v3 = vpop.f32.mrf.mxu0 }
  0xf2   :  { %v504_v4 = vpack.c.bf16 %v425_v0, %v424_v63  ;;  %v539_v6 = vadd.f32 %v538_v3, %v537_v62  ;;  %v566_v7 = vpop.f32.mrf.mxu1  ;;  %v418_v8 = vadd.f32 %v564_v5, %v369_v1 }
  0xf3   :  { %v567_v10 = vadd.f32 %v566_v7, %v565_v2 }
  0xf4   :  { %505 = vst [vmem:[%s764_s3] sm:$0xff] %v504_v4   ;;  %v372_v9 = vadd.f32 %v539_v6, %v452_v42  ;;  %v426_v12 = vmax.f32 %v418_v8, 0.0 }
  0xf6   :  { %v421_v11 = vadd.f32 %v567_v10, %v372_v9 }
  0xf8   :  { %v427_v13 = vmax.f32 %v421_v11, 0.0 }
  0xfa   :  { %v509_v14 = vpack.c.bf16 %v427_v13, %v426_v12 }
  0xfc   :  { %511 = vst [vmem:[%s764_s3 + $0x8] sm:$0xff] %v509_v14  }

// kernel: dqn_forward.6
= control target key start
LH: loop header
LB: loop body
LE: loop exit
PB: predicated region body
PF: predicated region fallthrough
CT: control target
= control target key end

     0   :  { %v690_v33 = vmov 0.0   ;;  %vm691_vm0 = vmmov 0   ;;  %s853_s1 = inlined_call_operand.vmem [shape: bf16[640,128], index: 1, kind: input, shape index: {}]   ;;  %s854_s0 = inlined_call_operand.vmem [shape: bf16[16,640], index: 0, kind: input, shape index: {}]   ;;  %s855_s2 = inlined_call_operand.vmem [shape: f32[1,128], index: 2, kind: input, shape index: {}]   ;;  %s856_s3 = inlined_call_operand.vmem [shape: bf16[16,128], index: 3, kind: output, shape index: {}]  }
   0x1   :  { %v643_v0 = vld [vmem:[%s853_s1 + $0x78] sm:$0xff]   ;;  %v647_v4 = vld [vmem:[%s853_s1 + $0x70] sm:$0xff]   ;;  %v651_v8 = vld [vmem:[%s853_s1 + $0x68] sm:$0xff]  }
   0x2   :  { %v644_v1 = vld [vmem:[%s853_s1 + $0x38] sm:$0xff]   ;;  %568 = vmatprep.subr.bf16.mxu0 %v643_v0  ;;  %v648_v5 = vld [vmem:[%s853_s1 + $0x30] sm:$0xff]   ;;  %v652_v9 = vld [vmem:[%s853_s1 + $0x28] sm:$0xff]  }
   0x3   :  { %v645_v2 = vld [vmem:[%s853_s1 + $0xf8] sm:$0xff]   ;;  %569 = vmatpush3.bf16.msra.mxu0 %v644_v1  ;;  %v649_v6 = vld [vmem:[%s853_s1 + $0xf0] sm:$0xff]   ;;  %v653_v10 = vld [vmem:[%s853_s1 + $0xe8] sm:$0xff]  }
   0x4   :  { %v646_v3 = vld [vmem:[%s853_s1 + $0xb8] sm:$0xff]   ;;  %590 = vmatprep.subr.bf16.mxu1 %v645_v2  ;;  %570 = vmatprep.subr.bf16.mxu0 %v647_v4  ;;  %v650_v7 = vld [vmem:[%s853_s1 + $0xb0] sm:$0xff]   ;;  %v654_v11 = vld [vmem:[%s853_s1 + $0xa8] sm:$0xff]  }
   0x5   :  { %591 = vmatpush3.bf16.msra.mxu1 %v646_v3  ;;  %v655_v12 = vld [vmem:[%s853_s1 + $0x60] sm:$0xff]   ;;  %v659_v16 = vld [vmem:[%s853_s1 + $0x58] sm:$0xff]   ;;  %v663_v20 = vld [vmem:[%s853_s1 + $0x50] sm:$0xff]  }
   0x6   :  { %592 = vmatprep.subr.bf16.mxu1 %v649_v6  ;;  %v656_v13 = vld [vmem:[%s853_s1 + $0x20] sm:$0xff]   ;;  %v660_v17 = vld [vmem:[%s853_s1 + $0x18] sm:$0xff]   ;;  %v664_v21 = vld [vmem:[%s853_s1 + $0x10] sm:$0xff]  }
   0x7   :  { %571 = vmatpush3.bf16.msra.mxu0 %v648_v5  ;;  %v657_v14 = vld [vmem:[%s853_s1 + $0xe0] sm:$0xff]   ;;  %v661_v18 = vld [vmem:[%s853_s1 + $0xd8] sm:$0xff]   ;;  %v665_v22 = vld [vmem:[%s853_s1 + $0xd0] sm:$0xff]  }
   0x8   :  { %572 = vmatprep.subr.bf16.mxu0 %v651_v8  ;;  %v658_v15 = vld [vmem:[%s853_s1 + $0xa0] sm:$0xff]   ;;  %v662_v19 = vld [vmem:[%s853_s1 + $0x98] sm:$0xff]   ;;  %v666_v23 = vld [vmem:[%s853_s1 + $0x90] sm:$0xff]  }
   0x9   :  { %593 = vmatpush3.bf16.msra.mxu1 %v650_v7  ;;  %v667_v24 = vld [vmem:[%s853_s1 + $0x48] sm:$0xff]   ;;  %v671_v28 = vld [vmem:[%s853_s1 + $0x40] sm:$0xff]   ;;  %v681_v37 = vld [vmem:[%s853_s1 + $0x138] sm:$0xff]  }
   0xa   :  { %594 = vmatprep.subr.bf16.mxu1 %v653_v10  ;;  %v668_v25 = vld [vmem:[%s853_s1 + $0x8] sm:$0xff]   ;;  %v672_v29 = vld [vmem:[%s853_s1] sm:$0xff]   ;;  %v682_v38 = vld [vmem:[%s853_s1 + $0x130] sm:$0xff]  }
   0xb   :  { %573 = vmatpush3.bf16.msra.mxu0 %v652_v9  ;;  %v669_v26 = vld [vmem:[%s853_s1 + $0xc8] sm:$0xff]   ;;  %v673_v30 = vld [vmem:[%s853_s1 + $0xc0] sm:$0xff]   ;;  %v685_v41 = vld [vmem:[%s853_s1 + $0x118] sm:$0xff]  }
   0xc   :  { %574 = vmatprep.subr.bf16.mxu0 %v655_v12  ;;  %v670_v27 = vld [vmem:[%s853_s1 + $0x88] sm:$0xff]   ;;  %v674_v31 = vld [vmem:[%s854_s0] ss:$20 sps:$4 sm:$0xff]   ;;  %v676_v32 = vld [vmem:[%s854_s0 + $0x4] ss:$20 sps:$4 sm:$0xff]  }
   0xd   :  { %595 = vmatpush3.bf16.msra.mxu1 %v654_v11  ;;  %v677_v34 = vld [vmem:[%s853_s1 + $0x80] sm:$0xff]   ;;  %406 = vmatprep.mubr.bf16.mxu0 %v676_v32  ;;  %v678_v35 = vld [vmem:[%s854_s0 + $0x8] ss:$20 sps:$4 sm:$0xff]   ;;  %v686_v42 = vld [vmem:[%s853_s1 + $0x110] sm:$0xff]  }
   0xe   :  { %596 = vmatprep.subr.bf16.mxu1 %v657_v14  ;;  %v680_v36 = vld [vmem:[%s854_s0 + $0xc] ss:$20 sps:$4 sm:$0xff]   ;;  %v689_v45 = vld [vmem:[%s854_s0 + $0x10] ss:$20 sps:$4 sm:$0xff]  }
   0xf   :  { %575 = vmatpush3.bf16.msra.mxu0 %v656_v13  ;;  %447 = vmatprep.mubr.bf16.mxu1 %v680_v36  ;;  %v683_v39 = vld [vmem:[%s853_s1 + $0x128] sm:$0xff]   ;;  %v684_v40 = vld [vmem:[%s853_s1 + $0x120] sm:$0xff]  }
  0x10   :  { %576 = vmatprep.subr.bf16.mxu0 %v659_v16  ;;  %v687_v43 = vld [vmem:[%s853_s1 + $0x108] sm:$0xff]   ;;  %v688_v44 = vld [vmem:[%s853_s1 + $0x100] sm:$0xff]  }
  0x11   :  { %597 = vmatpush3.bf16.msra.mxu1 %v658_v15  ;;  %v513_v54 = vld [vmem:[%s855_s2] ss:$0 sm:$0xff] }
  0x12   :  { %598 = vmatprep.subr.bf16.mxu1 %v661_v18 }
  0x13   :  { %577 = vmatpush3.bf16.msra.mxu0 %v660_v17 }
  0x14   :  { %578 = vmatprep.subr.bf16.mxu0 %v663_v20 }
  0x15   :  { %599 = vmatpush3.bf16.msra.mxu1 %v662_v19 }
  0x16   :  { %600 = vmatprep.subr.bf16.mxu1 %v665_v22 }
  0x17   :  { %579 = vmatpush3.bf16.msra.mxu0 %v664_v21 }
  0x18   :  { %580 = vmatprep.subr.bf16.mxu0 %v667_v24 }
  0x19   :  { %601 = vmatpush3.bf16.msra.mxu1 %v666_v23 }
  0x1a   :  { %602 = vmatprep.subr.bf16.mxu1 %v669_v26 }
  0x1b   :  { %581 = vmatpush3.bf16.msra.mxu0 %v668_v25 }
  0x1c   :  { %582 = vmatprep.subr.bf16.mxu0 %v671_v28 }
  0x1d   :  { %603 = vmatpush3.bf16.msra.mxu1 %v670_v27 }
  0x1e   :  { %604 = vmatprep.subr.bf16.mxu1 %v673_v30 }
  0x1f   :  { %583 = vmatpush3.bf16.msra.mxu0 %v672_v29 }
  0x20   :  { %621 = vmatprep.subr.bf16.mxu0 %v690_v33 }
  0x21   :  { %605 = vmatpush3.bf16.msra.mxu1 %v677_v34 }
  0x22   :  { %407 = vmatmul.mubr.bf16.vlgmr.msra.gmra.mxu0 %v674_v31 }
  0x23   :  { %637 = vmatprep.mubr.msk.bf16.mxu0 %vm691_vm0, %v690_v33  ;;  %622 = vmatpush3.bf16.msra.mxu0 %v681_v37 }
  0x24   :  { %448 = vmatmul.mubr.bf16.vlgmr.msra.gmra.mxu1 %v678_v35  ;;  %623 = vmatprep.subr.bf16.mxu0 %v690_v33 }
  0x27   :  { %624 = vmatpush3.bf16.msra.mxu0 %v682_v38 }
  0x28   :  { %625 = vmatprep.subr.bf16.mxu0 %v690_v33 }
  0x2b   :  { %626 = vmatpush3.bf16.msra.mxu0 %v683_v39 }
  0x2c   :  { %627 = vmatprep.subr.bf16.mxu0 %v690_v33 }
  0x2f   :  { %628 = vmatpush3.bf16.msra.mxu0 %v684_v40 }
  0x30   :  { %629 = vmatprep.subr.bf16.mxu0 %v690_v33 }
  0x33   :  { %630 = vmatpush3.bf16.msra.mxu0 %v685_v41 }
  0x34   :  { %631 = vmatprep.subr.bf16.mxu0 %v690_v33 }
  0x37   :  { %632 = vmatpush3.bf16.msra.mxu0 %v686_v42 }
  0x38   :  { %633 = vmatprep.subr.bf16.mxu0 %v690_v33 }
  0x3b   :  { %634 = vmatpush3.bf16.msra.mxu0 %v687_v43 }
  0x3c   :  { %635 = vmatprep.subr.bf16.mxu0 %v690_v33 }
  0x3f   :  { %636 = vmatpush3.bf16.msra.mxu0 %v688_v44 }
  0x42   :  { %638 = vmatmul.mubr.bf16.vlgmr.msra.gmra.mxu0 %v689_v45 }
  0xe2   :  { %v584_v46 = vpop.f32.mrf.mxu0 }
  0xe4   :  { %v585_v47 = vpop.f32.mrf.mxu0  ;;  %v606_v48 = vpop.f32.mrf.mxu1 }
  0xe5   :  { %v586_v53 = vadd.f32 %v585_v47, %v584_v46 }
  0xe6   :  { %v587_v49 = vpop.f32.mrf.mxu0  ;;  %v607_v50 = vpop.f32.mrf.mxu1 }
  0xe7   :  { %v409_v57 = vadd.f32 %v586_v53, %v513_v54  ;;  %v608_v58 = vadd.f32 %v607_v50, %v606_v48 }
  0xe8   :  { %v588_v51 = vpop.f32.mrf.mxu0  ;;  %v609_v52 = vpop.f32.mrf.mxu1 }
  0xe9   :  { %v589_v55 = vadd.f32 %v588_v51, %v587_v49  ;;  %v450_v62 = vadd.f32 %v608_v58, %v409_v57 }
  0xea   :  { %v610_v56 = vpop.f32.mrf.mxu1 }
  0xeb   :  { %v412_v59 = vadd.f32 %v589_v55, %v513_v54  ;;  %v611_v60 = vadd.f32 %v610_v56, %v609_v52 }
  0xed   :  { %v453_v1 = vadd.f32 %v611_v60, %v412_v59 }
 0x102   :  { %v490_v61 = vpop.f32.mrf.mxu0 }
 0x103   :  { %v491_v0 = vadd.f32 %v490_v61, %v450_v62 }
 0x104   :  { %v639_v63 = vpop.f32.mrf.mxu0 }
 0x105   :  { %v497_v5 = vmax.f32 %v491_v0, 0.0 }
 0x106   :  { %v493_v2 = vpop.f32.mrf.mxu0 }
 0x107   :  { %v494_v3 = vadd.f32 %v493_v2, %v453_v1 }
 0x108   :  { %v640_v4 = vpop.f32.mrf.mxu0 }
 0x109   :  { %v498_v6 = vmax.f32 %v494_v3, 0.0 }
 0x10b   :  { %v566_v7 = vpack.c.bf16 %v498_v6, %v497_v5 }
 0x10d   :  { %567 = vst [vmem:[%s856_s3] sm:$0xff] %v566_v7  }

// kernel: dqn_forward.7
= control target key start
LH: loop header
LB: loop body
LE: loop exit
PB: predicated region body
PF: predicated region fallthrough
CT: control target
= control target key end

     0   :  { %v1773_v3 = vmov 0   ;;  %vm1450_vm1 = vcmask 7168   ;;  %s2236_s1 = inlined_call_operand.vmem [shape: bf16[128,1024], index: 1, kind: input, shape index: {}]   ;;  %s2237_s0 = inlined_call_operand.vmem [shape: bf16[16,128], index: 0, kind: input, shape index: {}]   ;;  %s2238_s3 = inlined_call_operand.vmem [shape: bf16[1024,128], index: 3, kind: input, shape index: {}]   ;;  %s2239_s2 = inlined_call_operand.vmem [shape: f32[1,1024], index: 2, kind: input, shape index: {}]   ;;  %s2240_s4 = inlined_call_operand.vmem [shape: f32[1,128], index: 4, kind: input, shape index: {}]   ;;  %s2241_s5 = inlined_call_operand.vmem [shape: f32[16,128], index: 5, kind: output, shape index: {}]  }
   0x1   :  { %v115_v0 = vld [vmem:[%s2236_s1 + $0x1c0] sm:$0xff]  ;;  %v116_v2 = vld [vmem:[%s2236_s1 + $0x1c8] sm:$0xff]  ;;  %481 = vmatprep.mubr.bf16.mxu0 %v1773_v3  ;;  %524 = vmatprep.mubr.bf16.mxu1 %v1773_v3  ;;  %v117_v60 = vld [vmem:[%s2236_s1 + $0x1d0] sm:$0xff] }
   0x2   :  { %v119_v1 = vld [vmem:[%s2236_s1 + $0x1e0] sm:$0xff]  ;;  %v120_v5 = vld [vmem:[%s2236_s1 + $0x1e8] sm:$0xff]  ;;  %1706 = vset.pattern.permute.xlu1 %v1773_v3  ;;  %1707 = vset.pattern.permute.xlu0 %v1773_v3  ;;  %v121_v63 = vld [vmem:[%s2236_s1 + $0x1f0] sm:$0xff] }
   0x3   :  { %v1543_v4 = vcombine.high %v115_v0, %v119_v1  ;;  %v1542_v6 = vcombine.low %v115_v0, %v119_v1  ;;  %v107_v7 = vld [vmem:[%s2236_s1 + $0x180] sm:$0xff]  ;;  %v1545_v9 = vcombine.high %v116_v2, %v120_v5  ;;  %v1544_v10 = vcombine.low %v116_v2, %v120_v5  ;;  %v108_v12 = vld [vmem:[%s2236_s1 + $0x188] sm:$0xff]  ;;  %v118_v1 = vld [vmem:[%s2236_s1 + $0x1d8] sm:$0xff] }
   0x4   :  { %v111_v8 = vld [vmem:[%s2236_s1 + $0x1a0] sm:$0xff]  ;;  %v112_v13 = vld [vmem:[%s2236_s1 + $0x1a8] sm:$0xff]  ;;  %v122_v2 = vld [vmem:[%s2236_s1 + $0x1f8] sm:$0xff] }
   0x5   :  { %v1535_v11 = vcombine.high %v107_v7, %v111_v8  ;;  %v99_v14 = vld [vmem:[%s2236_s1 + $0x140] sm:$0xff]  ;;  %449 = vmatprep.subr.bf16.mxu0 %v1543_v4  ;;  %v1537_v15 = vcombine.high %v108_v12, %v112_v13  ;;  %v100_v17 = vld [vmem:[%s2236_s1 + $0x148] sm:$0xff]  ;;  %492 = vmatprep.subr.bf16.mxu1 %v1545_v9  ;;  %v1534_v19 = vcombine.low %v107_v7, %v111_v8  ;;  %v109_v5 = vld [vmem:[%s2236_s1 + $0x190] sm:$0xff] }
   0x6   :  { %v103_v16 = vld [vmem:[%s2236_s1 + $0x160] sm:$0xff]  ;;  %v104_v18 = vld [vmem:[%s2236_s1 + $0x168] sm:$0xff]  ;;  %450 = vmatpush1.bf16.msra.mxu0 %v1542_v6  ;;  %493 = vmatpush1.bf16.msra.mxu1 %v1544_v10  ;;  %v1536_v20 = vcombine.low %v108_v12, %v112_v13  ;;  %v1547_v8 = vcombine.high %v117_v60, %v121_v63  ;;  %v113_v9 = vld [vmem:[%s2236_s1 + $0x1b0] sm:$0xff]  ;;  %v1549_v10 = vcombine.high %v118_v1, %v122_v2 }
   0x7   :  { %451 = vmatprep.subr.bf16.mxu0 %v1535_v11  ;;  %v1527_v21 = vcombine.high %v99_v14, %v103_v16  ;;  %494 = vmatprep.subr.bf16.mxu1 %v1537_v15  ;;  %v1529_v22 = vcombine.high %v100_v17, %v104_v18  ;;  %v91_v23 = vld [vmem:[%s2236_s1 + $0x100] sm:$0xff]  ;;  %v92_v25 = vld [vmem:[%s2236_s1 + $0x108] sm:$0xff]  ;;  %v1526_v27 = vcombine.low %v99_v14, %v103_v16  ;;  %v110_v11 = vld [vmem:[%s2236_s1 + $0x198] sm:$0xff] }
   0x8   :  { %v95_v24 = vld [vmem:[%s2236_s1 + $0x120] sm:$0xff]  ;;  %v96_v26 = vld [vmem:[%s2236_s1 + $0x128] sm:$0xff]  ;;  %v1528_v28 = vcombine.low %v100_v17, %v104_v18  ;;  %v114_v12 = vld [vmem:[%s2236_s1 + $0x1b8] sm:$0xff]  ;;  %v1546_v13 = vcombine.low %v117_v60, %v121_v63  ;;  %v1548_v15 = vcombine.low %v118_v1, %v122_v2  ;;  %v1539_v16 = vcombine.high %v109_v5, %v113_v9 }
   0x9   :  { %v1519_v29 = vcombine.high %v91_v23, %v95_v24  ;;  %v1521_v30 = vcombine.high %v92_v25, %v96_v26  ;;  %v83_v31 = vld [vmem:[%s2236_s1 + $0xc0] sm:$0xff]  ;;  %v84_v33 = vld [vmem:[%s2236_s1 + $0xc8] sm:$0xff]  ;;  %v1518_v35 = vcombine.low %v91_v23, %v95_v24  ;;  %v1520_v36 = vcombine.low %v92_v25, %v96_v26  ;;  %v101_v14 = vld [vmem:[%s2236_s1 + $0x150] sm:$0xff] }
   0xa   :  { %452 = vmatpush1.bf16.msra.mxu0 %v1534_v19  ;;  %495 = vmatpush1.bf16.msra.mxu1 %v1536_v20  ;;  %v87_v32 = vld [vmem:[%s2236_s1 + $0xe0] sm:$0xff]  ;;  %v88_v34 = vld [vmem:[%s2236_s1 + $0xe8] sm:$0xff]  ;;  %v105_v17 = vld [vmem:[%s2236_s1 + $0x170] sm:$0xff]  ;;  %v1541_v18 = vcombine.high %v110_v11, %v114_v12  ;;  %v1540_v23 = vcombine.low %v110_v11, %v114_v12 }
   0xb   :  { %453 = vmatprep.subr.bf16.mxu0 %v1527_v21  ;;  %496 = vmatprep.subr.bf16.mxu1 %v1529_v22  ;;  %v1511_v37 = vcombine.high %v83_v31, %v87_v32  ;;  %v1513_v38 = vcombine.high %v84_v33, %v88_v34  ;;  %v75_v39 = vld [vmem:[%s2236_s1 + $0x80] sm:$0xff]  ;;  %v76_v41 = vld [vmem:[%s2236_s1 + $0x88] sm:$0xff]  ;;  %v1510_v43 = vcombine.low %v83_v31, %v87_v32  ;;  %v102_v19 = vld [vmem:[%s2236_s1 + $0x158] sm:$0xff] }
   0xc   :  { %v79_v40 = vld [vmem:[%s2236_s1 + $0xa0] sm:$0xff]  ;;  %v80_v42 = vld [vmem:[%s2236_s1 + $0xa8] sm:$0xff]  ;;  %v1512_v44 = vcombine.low %v84_v33, %v88_v34  ;;  %v106_v20 = vld [vmem:[%s2236_s1 + $0x178] sm:$0xff]  ;;  %v1538_v21 = vcombine.low %v109_v5, %v113_v9  ;;  %v1531_v24 = vcombine.high %v101_v14, %v105_v17 }
   0xd   :  { %v1503_v45 = vcombine.high %v75_v39, %v79_v40  ;;  %v1505_v46 = vcombine.high %v76_v41, %v80_v42  ;;  %v67_v47 = vld [vmem:[%s2236_s1 + $0x40] sm:$0xff]  ;;  %v68_v49 = vld [vmem:[%s2236_s1 + $0x48] sm:$0xff]  ;;  %v1502_v51 = vcombine.low %v75_v39, %v79_v40  ;;  %v1504_v52 = vcombine.low %v76_v41, %v80_v42  ;;  %v93_v22 = vld [vmem:[%s2236_s1 + $0x110] sm:$0xff] }
   0xe   :  { %454 = vmatpush1.bf16.msra.mxu0 %v1526_v27  ;;  %497 = vmatpush1.bf16.msra.mxu1 %v1528_v28  ;;  %v71_v48 = vld [vmem:[%s2236_s1 + $0x60] sm:$0xff]  ;;  %v72_v50 = vld [vmem:[%s2236_s1 + $0x68] sm:$0xff]  ;;  %v97_v25 = vld [vmem:[%s2236_s1 + $0x130] sm:$0xff]  ;;  %v1533_v26 = vcombine.high %v102_v19, %v106_v20  ;;  %v1532_v32 = vcombine.low %v102_v19, %v106_v20 }
   0xf   :  { %455 = vmatprep.subr.bf16.mxu0 %v1519_v29  ;;  %498 = vmatprep.subr.bf16.mxu1 %v1521_v30  ;;  %v1495_v53 = vcombine.high %v67_v47, %v71_v48  ;;  %v59_v54 = vld [vmem:[%s2236_s1] sm:$0xff]  ;;  %v1497_v56 = vcombine.high %v68_v49, %v72_v50  ;;  %v60_v57 = vld [vmem:[%s2236_s1 + $0x8] sm:$0xff]  ;;  %v1494_v59 = vcombine.low %v67_v47, %v71_v48  ;;  %v94_v27 = vld [vmem:[%s2236_s1 + $0x118] sm:$0xff] }
  0x10   :  { %v63_v55 = vld [vmem:[%s2236_s1 + $0x20] sm:$0xff]  ;;  %v64_v58 = vld [vmem:[%s2236_s1 + $0x28] sm:$0xff]  ;;  %v1496_v61 = vcombine.low %v68_v49, %v72_v50  ;;  %v98_v28 = vld [vmem:[%s2236_s1 + $0x138] sm:$0xff]  ;;  %v1530_v29 = vcombine.low %v101_v14, %v105_v17  ;;  %v1523_v33 = vcombine.high %v93_v22, %v97_v25 }
  0x11   :  { %v1487_v62 = vcombine.high %v59_v54, %v63_v55  ;;  %v1489_v0 = vcombine.high %v60_v57, %v64_v58  ;;  %v1486_v4 = vcombine.low %v59_v54, %v63_v55  ;;  %v1488_v6 = vcombine.low %v60_v57, %v64_v58  ;;  %v1922_v7 = vld [vmem:[%s2237_s0] sm:$0xff]   ;;  %v85_v30 = vld [vmem:[%s2236_s1 + $0xd0] sm:$0xff]  ;;  %v86_v34 = vld [vmem:[%s2236_s1 + $0xd8] sm:$0xff] }
  0x12   :  { %456 = vmatpush1.bf16.msra.mxu0 %v1518_v35  ;;  %499 = vmatpush1.bf16.msra.mxu1 %v1520_v36  ;;  %v89_v31 = vld [vmem:[%s2236_s1 + $0xf0] sm:$0xff]  ;;  %v90_v35 = vld [vmem:[%s2236_s1 + $0xf8] sm:$0xff]  ;;  %v1522_v36 = vcombine.low %v93_v22, %v97_v25  ;;  %v1524_v39 = vcombine.low %v94_v27, %v98_v28  ;;  %v1717_v12 = vld [vmem:[%s2238_s3 + $0x68] sm:$0xff]  }
  0x13   :  { %457 = vmatprep.subr.bf16.mxu0 %v1511_v37  ;;  %500 = vmatprep.subr.bf16.mxu1 %v1513_v38  ;;  %v77_v37 = vld [vmem:[%s2236_s1 + $0x90] sm:$0xff]  ;;  %v1515_v40 = vcombine.high %v85_v30, %v89_v31  ;;  %v78_v41 = vld [vmem:[%s2236_s1 + $0x98] sm:$0xff]  ;;  %v1516_v47 = vcombine.low %v86_v34, %v90_v35  ;;  %v1719_v14 = vld [vmem:[%s2238_s3 + $0x28] sm:$0xff]  }
  0x14   :  { %v81_v38 = vld [vmem:[%s2236_s1 + $0xb0] sm:$0xff]  ;;  %v82_v42 = vld [vmem:[%s2236_s1 + $0xb8] sm:$0xff]  ;;  %v1723_v17 = vld [vmem:[%s2238_s3 + $0x20] sm:$0xff]  }
  0x15   :  { %v1507_v48 = vcombine.high %v77_v37, %v81_v38  ;;  %v70_v49 = vld [vmem:[%s2236_s1 + $0x58] sm:$0xff]  ;;  %v65_v54 = vld [vmem:[%s2236_s1 + $0x30] sm:$0xff]  ;;  %v1508_v55 = vcombine.low %v78_v41, %v82_v42 }
  0x16   :  { %458 = vmatpush1.bf16.msra.mxu0 %v1510_v43  ;;  %501 = vmatpush1.bf16.msra.mxu1 %v1512_v44  ;;  %v1517_v43 = vcombine.high %v86_v34, %v90_v35  ;;  %v1514_v44 = vcombine.low %v85_v30, %v89_v31  ;;  %v74_v50 = vld [vmem:[%s2236_s1 + $0x78] sm:$0xff]  ;;  %v1714_v9 = vld [vmem:[%s2238_s3 + $0xf0] sm:$0xff]   ;;  %v1736_v30 = vld [vmem:[%s2238_s3 + $0x88] sm:$0xff]  }
  0x17   :  { %459 = vmatprep.subr.bf16.mxu0 %v1503_v45  ;;  %502 = vmatprep.subr.bf16.mxu1 %v1505_v46  ;;  %v69_v45 = vld [vmem:[%s2236_s1 + $0x50] sm:$0xff]  ;;  %v62_v57 = vld [vmem:[%s2236_s1 + $0x18] sm:$0xff]  ;;  %v1737_v31 = vld [vmem:[%s2238_s3 + $0x40] sm:$0xff]  }
  0x18   :  { %v73_v46 = vld [vmem:[%s2236_s1 + $0x70] sm:$0xff]  ;;  %v66_v58 = vld [vmem:[%s2236_s1 + $0x38] sm:$0xff]  ;;  %v1740_v34 = vld [vmem:[%s2238_s3 + $0x80] sm:$0xff]  }
  0x19   :  { %v1498_v60 = vcombine.low %v69_v45, %v73_v46  ;;  %v1493_v63 = vcombine.high %v62_v57, %v66_v58  ;;  %v1710_v2 = vld [vmem:[%s2238_s3 + $0xf8] sm:$0xff]   ;;  %v1716_v11 = vld [vmem:[%s2238_s3 + $0xb0] sm:$0xff]  }
  0x1a   :  { %460 = vmatpush1.bf16.msra.mxu0 %v1502_v51  ;;  %503 = vmatpush1.bf16.msra.mxu1 %v1504_v52  ;;  %v1509_v51 = vcombine.high %v78_v41, %v82_v42  ;;  %v1506_v52 = vcombine.low %v77_v37, %v81_v38  ;;  %v1711_v5 = vld [vmem:[%s2238_s3 + $0x38] sm:$0xff]   ;;  %v1731_v25 = vld [vmem:[%s2238_s3 + $0x10] sm:$0xff]  }
  0x1b   :  { %461 = vmatprep.subr.bf16.mxu0 %v1495_v53  ;;  %504 = vmatprep.subr.bf16.mxu1 %v1497_v56  ;;  %v61_v53 = vld [vmem:[%s2236_s1 + $0x10] sm:$0xff]  ;;  %v1499_v56 = vcombine.high %v69_v45, %v73_v46  ;;  %v1725_v19 = vld [vmem:[%s2238_s3 + $0x58] sm:$0xff]  }
  0x1c   :  { %v1490_v1 = vcombine.low %v61_v53, %v65_v54  ;;  %v1726_v20 = vld [vmem:[%s2238_s3 + $0xd8] sm:$0xff]  }
  0x1d   :  { %v1728_v22 = vld [vmem:[%s2238_s3 + $0x98] sm:$0xff]  }
  0x1e   :  { %462 = vmatpush1.bf16.msra.mxu0 %v1494_v59  ;;  %505 = vmatpush1.bf16.msra.mxu1 %v1496_v61  ;;  %v1501_v59 = vcombine.high %v70_v49, %v74_v50  ;;  %v1500_v61 = vcombine.low %v70_v49, %v74_v50  ;;  %v1742_v35 = vld [vmem:[%s2238_s3 + $0x1f8] sm:$0xff]  }
  0x1f   :  { %463 = vmatprep.subr.bf16.mxu0 %v1487_v62  ;;  %506 = vmatprep.subr.bf16.mxu1 %v1489_v0  ;;  %v1491_v62 = vcombine.high %v61_v53, %v65_v54  ;;  %v1709_v0 = vld [vmem:[%s2238_s3 + $0x78] sm:$0xff]  }
  0x22   :  { %464 = vmatpush1.bf16.msra.mxu0 %v1486_v4  ;;  %507 = vmatpush1.bf16.msra.mxu1 %v1488_v6  ;;  %v1492_v4 = vcombine.low %v62_v57, %v66_v58  ;;  %v1712_v6 = vld [vmem:[%s2238_s3 + $0xb8] sm:$0xff]  }
  0x23   :  { %535 = vmatprep.subr.bf16.mxu0 %v1547_v8  ;;  %578 = vmatprep.subr.bf16.mxu1 %v1549_v10  ;;  %v1713_v8 = vld [vmem:[%s2238_s3 + $0x70] sm:$0xff]  }
  0x24   :  { %v1715_v10 = vld [vmem:[%s2238_s3 + $0x30] sm:$0xff]  }
  0x25   :  { %482 = vmatmul.mubr.bf16.vlgmr.msra.gmra.mxu0 %v1922_v7  ;;  %525 = vmatmul.mubr.bf16.vlgmr.msra.gmra.mxu1 %v1922_v7 }
  0x26   :  { %536 = vmatpush1.bf16.msra.mxu0 %v1546_v13  ;;  %579 = vmatpush1.bf16.msra.mxu1 %v1548_v15  ;;  %v1718_v13 = vld [vmem:[%s2238_s3 + $0xe8] sm:$0xff]  }
  0x27   :  { %537 = vmatprep.subr.bf16.mxu0 %v1539_v16  ;;  %580 = vmatprep.subr.bf16.mxu1 %v1541_v18  ;;  %v1720_v15 = vld [vmem:[%s2238_s3 + $0xa8] sm:$0xff]   ;;  %v1722_v16 = vld [vmem:[%s2238_s3 + $0xe0] sm:$0xff]  }
  0x28   :  { %567 = vmatprep.mubr.bf16.mxu0 %v1773_v3  ;;  %610 = vmatprep.mubr.bf16.mxu1 %v1773_v3  ;;  %v1525_v3 = vcombine.high %v94_v27, %v98_v28  ;;  %v1724_v18 = vld [vmem:[%s2238_s3 + $0xa0] sm:$0xff]   ;;  %v1733_v27 = vld [vmem:[%s2238_s3 + $0x48] sm:$0xff]  }
  0x29   :  { %v1734_v28 = vld [vmem:[%s2238_s3 + $0xc8] sm:$0xff]  }
  0x2a   :  { %538 = vmatpush1.bf16.msra.mxu0 %v1538_v21  ;;  %581 = vmatpush1.bf16.msra.mxu1 %v1540_v23  ;;  %v1727_v21 = vld [vmem:[%s2238_s3 + $0x18] sm:$0xff]   ;;  %v1729_v23 = vld [vmem:[%s2238_s3 + $0x50] sm:$0xff]  }
  0x2b   :  { %539 = vmatprep.subr.bf16.mxu0 %v1531_v24  ;;  %582 = vmatprep.subr.bf16.mxu1 %v1533_v26  ;;  %v1730_v24 = vld [vmem:[%s2238_s3 + $0xd0] sm:$0xff]  }
  0x2c   :  { %v1732_v26 = vld [vmem:[%s2238_s3 + $0x90] sm:$0xff]  }
  0x2e   :  { %540 = vmatpush1.bf16.msra.mxu0 %v1530_v29  ;;  %583 = vmatpush1.bf16.msra.mxu1 %v1532_v32  ;;  %v1735_v29 = vld [vmem:[%s2238_s3 + $0x8] sm:$0xff]   ;;  %v1738_v32 = vld [vmem:[%s2238_s3 + $0xc0] sm:$0xff]  }
  0x2f   :  { %541 = vmatprep.subr.bf16.mxu0 %v1523_v33  ;;  %584 = vmatprep.subr.bf16.mxu1 %v1525_v3  ;;  %v1739_v33 = vld [vmem:[%s2238_s3] sm:$0xff]   ;;  %v1741_v3 = vld [vmem:[%s2238_s3 + $0x178] sm:$0xff]  }
  0x32   :  { %542 = vmatpush1.bf16.msra.mxu0 %v1522_v36  ;;  %585 = vmatpush1.bf16.msra.mxu1 %v1524_v39  ;;  %v674_v36 = vlaneseq }
  0x33   :  { %543 = vmatprep.subr.bf16.mxu0 %v1515_v40  ;;  %586 = vmatprep.subr.bf16.mxu1 %v1517_v43  ;;  %v2120_v40 = vld [vmem:[%s2239_s2] sm:$0xff] }
  0x34   :  { %v2113_v37 = vshrl.u32 %v674_v36, 7 }
  0x36   :  { %544 = vmatpush1.bf16.msra.mxu0 %v1514_v44  ;;  %587 = vmatpush1.bf16.msra.mxu1 %v1516_v47  ;;  %v684_v38 = vsub.s32 2, %v2113_v37  ;;  %v680_v39 = vsub.s32 1, %v2113_v37  ;;  %v676_v41 = vsub.s32 0, %v2113_v37  ;;  %v688_v42 = vsub.s32 3, %v2113_v37 }
  0x37   :  { %545 = vmatprep.subr.bf16.mxu0 %v1507_v48  ;;  %588 = vmatprep.subr.bf16.mxu1 %v1509_v51  ;;  %vm1444_vm0 = vcmp.lt.s32.totalorder %v2113_v37, 2 }
  0x38   :  { %v685_v45 = vrot.slane %v2120_v40, %v684_v38  ;;  %v681_v46 = vrot.slane %v2120_v40, %v680_v39  ;;  %v677_v47 = vrot.slane %v2120_v40, %v676_v41  ;;  %v689_v49 = vrot.slane %v2120_v40, %v688_v42  ;;  %v1764_v38 = vld [vmem:[%s2238_s3 + $0x190] sm:$0xff]   ;;  %v1765_v39 = vld [vmem:[%s2238_s3 + $0x148] sm:$0xff]  }
  0x3a   :  { %546 = vmatpush1.bf16.msra.mxu0 %v1506_v52  ;;  %589 = vmatpush1.bf16.msra.mxu1 %v1508_v55 }
  0x3b   :  { %547 = vmatprep.subr.bf16.mxu0 %v1499_v56  ;;  %590 = vmatprep.subr.bf16.mxu1 %v1501_v59 }
  0x3e   :  { %548 = vmatpush1.bf16.msra.mxu0 %v1498_v60  ;;  %591 = vmatpush1.bf16.msra.mxu1 %v1500_v61 }
  0x3f   :  { %549 = vmatprep.subr.bf16.mxu0 %v1491_v62  ;;  %592 = vmatprep.subr.bf16.mxu1 %v1493_v63 }
  0x42   :  { %550 = vmatpush1.bf16.msra.mxu0 %v1490_v1  ;;  %593 = vmatpush1.bf16.msra.mxu1 %v1492_v4 }
  0x43   :  { %1615 = vmatprep.subr.bf16.mxu0 %v1709_v0  ;;  %1637 = vmatprep.subr.bf16.mxu1 %v1710_v2 }
  0x45   :  { %568 = vmatmul.mubr.bf16.vlgmr.msra.gmra.mxu0 %v1922_v7  ;;  %611 = vmatmul.mubr.bf16.vlgmr.msra.gmra.mxu1 %v1922_v7  ;;  %v1721_v7 = vld [vmem:[%s2238_s3 + $0x60] sm:$0xff]  }
  0x46   :  { %1616 = vmatpush3.bf16.msra.mxu0 %v1711_v5  ;;  %1638 = vmatpush3.bf16.msra.mxu1 %v1712_v6 }
  0x47   :  { %1617 = vmatprep.subr.bf16.mxu0 %v1713_v8  ;;  %1639 = vmatprep.subr.bf16.mxu1 %v1714_v9 }
  0x4a   :  { %1618 = vmatpush3.bf16.msra.mxu0 %v1715_v10  ;;  %1640 = vmatpush3.bf16.msra.mxu1 %v1716_v11  ;;  %v1743_v10 = vld [vmem:[%s2238_s3 + $0x138] sm:$0xff]  }
  0x4b   :  { %1619 = vmatprep.subr.bf16.mxu0 %v1717_v12  ;;  %1641 = vmatprep.subr.bf16.mxu1 %v1718_v13  ;;  %v1744_v13 = vld [vmem:[%s2238_s3 + $0x1b8] sm:$0xff]  }
  0x4e   :  { %1620 = vmatpush3.bf16.msra.mxu0 %v1719_v14  ;;  %1642 = vmatpush3.bf16.msra.mxu1 %v1720_v15  ;;  %v1745_v14 = vld [vmem:[%s2238_s3 + $0x170] sm:$0xff]  }
  0x4f   :  { %1621 = vmatprep.subr.bf16.mxu0 %v1721_v7  ;;  %1643 = vmatprep.subr.bf16.mxu1 %v1722_v16  ;;  %v1746_v7 = vld [vmem:[%s2238_s3 + $0x1f0] sm:$0xff]  }
  0x50   :  { %v1747_v16 = vld [vmem:[%s2238_s3 + $0x130] sm:$0xff]  }
  0x52   :  { %1622 = vmatpush3.bf16.msra.mxu0 %v1723_v17  ;;  %1644 = vmatpush3.bf16.msra.mxu1 %v1724_v18  ;;  %v1748_v17 = vld [vmem:[%s2238_s3 + $0x1b0] sm:$0xff]   ;;  %v1749_v18 = vld [vmem:[%s2238_s3 + $0x168] sm:$0xff]  }
  0x53   :  { %1623 = vmatprep.subr.bf16.mxu0 %v1725_v19  ;;  %1645 = vmatprep.subr.bf16.mxu1 %v1726_v20  ;;  %v1750_v19 = vld [vmem:[%s2238_s3 + $0x1e8] sm:$0xff]  }
  0x54   :  { %v1751_v20 = vld [vmem:[%s2238_s3 + $0x128] sm:$0xff]  }
  0x56   :  { %1624 = vmatpush3.bf16.msra.mxu0 %v1727_v21  ;;  %1646 = vmatpush3.bf16.msra.mxu1 %v1728_v22  ;;  %v1752_v21 = vld [vmem:[%s2238_s3 + $0x1a8] sm:$0xff]   ;;  %v1753_v22 = vld [vmem:[%s2238_s3 + $0x160] sm:$0xff]  }
  0x57   :  { %1625 = vmatprep.subr.bf16.mxu0 %v1729_v23  ;;  %1647 = vmatprep.subr.bf16.mxu1 %v1730_v24  ;;  %v1754_v23 = vld [vmem:[%s2238_s3 + $0x1e0] sm:$0xff]  }
  0x58   :  { %v1755_v24 = vld [vmem:[%s2238_s3 + $0x120] sm:$0xff]  }
  0x5a   :  { %1626 = vmatpush3.bf16.msra.mxu0 %v1731_v25  ;;  %1648 = vmatpush3.bf16.msra.mxu1 %v1732_v26  ;;  %v1756_v25 = vld [vmem:[%s2238_s3 + $0x1a0] sm:$0xff]   ;;  %v1757_v26 = vld [vmem:[%s2238_s3 + $0x158] sm:$0xff]  }
  0x5b   :  { %1627 = vmatprep.subr.bf16.mxu0 %v1733_v27  ;;  %1649 = vmatprep.subr.bf16.mxu1 %v1734_v28  ;;  %v1758_v27 = vld [vmem:[%s2238_s3 + $0x1d8] sm:$0xff]  }
  0x5c   :  { %v1759_v28 = vld [vmem:[%s2238_s3 + $0x118] sm:$0xff]  }
  0x5e   :  { %1628 = vmatpush3.bf16.msra.mxu0 %v1735_v29  ;;  %1650 = vmatpush3.bf16.msra.mxu1 %v1736_v30  ;;  %v1760_v29 = vld [vmem:[%s2238_s3 + $0x198] sm:$0xff]   ;;  %v1761_v30 = vld [vmem:[%s2238_s3 + $0x150] sm:$0xff]  }
  0x5f   :  { %1629 = vmatprep.subr.bf16.mxu0 %v1737_v31  ;;  %1651 = vmatprep.subr.bf16.mxu1 %v1738_v32  ;;  %v696_v31 = vsub.s32 5, %v2113_v37  ;;  %v1762_v32 = vld [vmem:[%s2238_s3 + $0x1d0] sm:$0xff]  }
  0x61   :  { %v697_v42 = vrot.slane %v2120_v40, %v696_v31 }
  0x62   :  { %1630 = vmatpush3.bf16.msra.mxu0 %v1739_v33  ;;  %1652 = vmatpush3.bf16.msra.mxu1 %v1740_v34  ;;  %v692_v33 = vsub.s32 4, %v2113_v37  ;;  %v704_v34 = vsub.s32 7, %v2113_v37 }
  0x63   :  { %1659 = vmatprep.subr.bf16.mxu0 %v1741_v3  ;;  %1681 = vmatprep.subr.bf16.mxu1 %v1742_v35  ;;  %v700_v3 = vsub.s32 6, %v2113_v37  ;;  %v1763_v35 = vld [vmem:[%s2238_s3 + $0x110] sm:$0xff]  }
  0xe5   :  { %v483_v43 = vpop.f32.mrf.mxu0  ;;  %v526_v44 = vpop.f32.mrf.mxu1 }
  0xe6   :  { %v716_v52 = vadd.f32 %v685_v45, %v526_v44  ;;  %v714_v56 = vadd.f32 %v677_v47, %v483_v43  ;;  %v1766_v43 = vld [vmem:[%s2238_s3 + $0x1c8] sm:$0xff]   ;;  %v693_v44 = vrot.slane %v2120_v40, %v692_v33 }
  0xe7   :  { %v485_v48 = vpop.f32.mrf.mxu0  ;;  %v528_v50 = vpop.f32.mrf.mxu1 }
  0xe8   :  { %v715_v53 = vadd.f32 %v681_v46, %v485_v48  ;;  %v717_v57 = vadd.f32 %v689_v49, %v528_v50  ;;  %v732_v0 = vmax.f32 %v716_v52, 0.0  ;;  %v730_v5 = vmax.f32 %v714_v56, 0.0  ;;  %v1769_v52 = vld [vmem:[%s2238_s3 + $0x140] sm:$0xff]  }
  0xe9   :  { %v487_v51 = vpop.f32.mrf.mxu0  ;;  %v530_v55 = vpop.f32.mrf.mxu1 }
  0xea   :  { %v722_v54 = vadd.f32 %v677_v47, %v487_v51  ;;  %v724_v58 = vadd.f32 %v685_v45, %v530_v55  ;;  %v731_v1 = vmax.f32 %v715_v53, 0.0  ;;  %v733_v6 = vmax.f32 %v717_v57, 0.0  ;;  %v1768_v51 = vld [vmem:[%s2238_s3 + $0x188] sm:$0xff]   ;;  %v1770_v55 = vld [vmem:[%s2238_s3 + $0x1c0] sm:$0xff]  }
  0xeb   :  { %v489_v59 = vpop.f32.mrf.mxu0  ;;  %v532_v61 = vpop.f32.mrf.mxu1  ;;  %v701_v47 = vrot.slane %v2120_v40, %v700_v3 }
  0xec   :  { %v723_v60 = vadd.f32 %v681_v46, %v489_v59  ;;  %v738_v62 = vmax.f32 %v722_v54, 0.0  ;;  %v725_v63 = vadd.f32 %v689_v49, %v532_v61  ;;  %v740_v2 = vmax.f32 %v724_v58, 0.0  ;;  %v1767_v49 = vld [vmem:[%s2238_s3 + $0x108] sm:$0xff]  }
  0xed   :  { %v705_v46 = vrot.slane %v2120_v40, %v704_v34 }
  0xee   :  { %v739_v4 = vmax.f32 %v723_v60, 0.0  ;;  %v741_v8 = vmax.f32 %v725_v63, 0.0  ;;  %v746_v11 = vpack.c.bf16 %v738_v62, %v730_v5  ;;  %v748_v15 = vpack.c.bf16 %v740_v2, %v732_v0  ;;  %v1771_v63 = vld [vmem:[%s2238_s3 + $0x100] sm:$0xff]  }
  0xef   :  { %v1772_v2 = vld [vmem:[%s2238_s3 + $0x180] sm:$0xff]  }
  0xf0   :  { %v747_v9 = vpack.c.bf16 %v739_v4, %v731_v1  ;;  %v749_v12 = vpack.c.bf16 %v741_v8, %v733_v6 }
  0xf2   :  { %1305 = vmatprep.mubr.bf16.mxu0 %v747_v9  ;;  %1346 = vmatprep.mubr.bf16.mxu1 %v749_v12 }
  0xf3   :  { %1306 = vmatmul.mubr.bf16.vlgmr.msra.gmra.mxu0 %v746_v11  ;;  %1347 = vmatmul.mubr.bf16.vlgmr.msra.gmra.mxu1 %v748_v15 }
  0xf4   :  { %1660 = vmatpush3.bf16.msra.mxu0 %v1743_v10  ;;  %1682 = vmatpush3.bf16.msra.mxu1 %v1744_v13 }
  0xf5   :  { %1661 = vmatprep.subr.bf16.mxu0 %v1745_v14  ;;  %1683 = vmatprep.subr.bf16.mxu1 %v1746_v7 }
  0xf8   :  { %1662 = vmatpush3.bf16.msra.mxu0 %v1747_v16  ;;  %1684 = vmatpush3.bf16.msra.mxu1 %v1748_v17 }
  0xf9   :  { %1663 = vmatprep.subr.bf16.mxu0 %v1749_v18  ;;  %1685 = vmatprep.subr.bf16.mxu1 %v1750_v19 }
  0xfc   :  { %1664 = vmatpush3.bf16.msra.mxu0 %v1751_v20  ;;  %1686 = vmatpush3.bf16.msra.mxu1 %v1752_v21 }
  0xfd   :  { %1665 = vmatprep.subr.bf16.mxu0 %v1753_v22  ;;  %1687 = vmatprep.subr.bf16.mxu1 %v1754_v23  ;;  %v1550_v22 = vld [vmem:[%s2240_s4] ss:$0 sm:$0xff] }
 0x100   :  { %1666 = vmatpush3.bf16.msra.mxu0 %v1755_v24  ;;  %1688 = vmatpush3.bf16.msra.mxu1 %v1756_v25 }
 0x101   :  { %1667 = vmatprep.subr.bf16.mxu0 %v1757_v26  ;;  %1689 = vmatprep.subr.bf16.mxu1 %v1758_v27 }
 0x104   :  { %1668 = vmatpush3.bf16.msra.mxu0 %v1759_v28  ;;  %1690 = vmatpush3.bf16.msra.mxu1 %v1760_v29 }
 0x105   :  { %v569_v36 = vpop.f32.mrf.mxu0  ;;  %1669 = vmatprep.subr.bf16.mxu0 %v1761_v30  ;;  %v612_v41 = vpop.f32.mrf.mxu1  ;;  %1691 = vmatprep.subr.bf16.mxu1 %v1762_v32 }
 0x106   :  { %v718_v56 = vadd.f32 %v693_v44, %v569_v36  ;;  %v720_v60 = vadd.f32 %v701_v47, %v612_v41 }
 0x107   :  { %v571_v45 = vpop.f32.mrf.mxu0  ;;  %v614_v48 = vpop.f32.mrf.mxu1 }
 0x108   :  { %1670 = vmatpush3.bf16.msra.mxu0 %v1763_v35  ;;  %1692 = vmatpush3.bf16.msra.mxu1 %v1764_v38  ;;  %v719_v53 = vadd.f32 %v697_v42, %v571_v45  ;;  %v721_v57 = vadd.f32 %v705_v46, %v614_v48  ;;  %v734_v8 = vmax.f32 %v718_v56, 0.0  ;;  %v736_v11 = vmax.f32 %v720_v60, 0.0 }
 0x109   :  { %v573_v50 = vpop.f32.mrf.mxu0  ;;  %1671 = vmatprep.subr.bf16.mxu0 %v1765_v39  ;;  %v616_v40 = vpop.f32.mrf.mxu1  ;;  %1693 = vmatprep.subr.bf16.mxu1 %v1766_v43 }
 0x10a   :  { %v726_v54 = vadd.f32 %v693_v44, %v573_v50  ;;  %v728_v58 = vadd.f32 %v701_v47, %v616_v40  ;;  %v735_v4 = vmax.f32 %v719_v53, 0.0  ;;  %v737_v9 = vmax.f32 %v721_v57, 0.0 }
 0x10b   :  { %v575_v59 = vpop.f32.mrf.mxu0  ;;  %v618_v62 = vpop.f32.mrf.mxu1 }
 0x10c   :  { %v727_v61 = vadd.f32 %v697_v42, %v575_v59  ;;  %1672 = vmatpush3.bf16.msra.mxu0 %v1767_v49  ;;  %v742_v0 = vmax.f32 %v726_v54, 0.0  ;;  %v729_v1 = vadd.f32 %v705_v46, %v618_v62  ;;  %1694 = vmatpush3.bf16.msra.mxu1 %v1768_v51  ;;  %v744_v5 = vmax.f32 %v728_v58, 0.0 }
 0x10d   :  { %1673 = vmatprep.subr.bf16.mxu0 %v1769_v52  ;;  %1695 = vmatprep.subr.bf16.mxu1 %v1770_v55 }
 0x10e   :  { %v743_v6 = vmax.f32 %v727_v61, 0.0  ;;  %v745_v10 = vmax.f32 %v729_v1, 0.0  ;;  %v750_v13 = vpack.c.bf16 %v742_v0, %v734_v8  ;;  %v752_v15 = vpack.c.bf16 %v744_v5, %v736_v11 }
 0x110   :  { %v751_v12 = vpack.c.bf16 %v743_v6, %v735_v4  ;;  %1674 = vmatpush3.bf16.msra.mxu0 %v1771_v63  ;;  %v753_v14 = vpack.c.bf16 %v745_v10, %v737_v9  ;;  %1696 = vmatpush3.bf16.msra.mxu1 %v1772_v2 }
 0x112   :  { %1387 = vmatprep.mubr.bf16.mxu0 %v751_v12  ;;  %1428 = vmatprep.mubr.bf16.mxu1 %v753_v14 }
 0x113   :  { %1388 = vmatmul.mubr.bf16.vlgmr.msra.gmra.mxu0 %v750_v13  ;;  %1429 = vmatmul.mubr.bf16.vlgmr.msra.gmra.mxu1 %v752_v15 }
 0x1b3   :  { %v1631_v7 = vpop.f32.mrf.mxu0  ;;  %v1653_v16 = vpop.f32.mrf.mxu1 }
 0x1b5   :  { %v1632_v17 = vpop.f32.mrf.mxu0  ;;  %v1654_v18 = vpop.f32.mrf.mxu1 }
 0x1b6   :  { %v1633_v20 = vadd.f32 %v1632_v17, %v1631_v7  ;;  %v1655_v28 = vadd.f32 %v1654_v18, %v1653_v16 }
 0x1b7   :  { %v1634_v19 = vpop.f32.mrf.mxu0  ;;  %v1656_v21 = vpop.f32.mrf.mxu1 }
 0x1b8   :  { %v1308_v24 = vadd.f32 %v1633_v20, %v1550_v22 }
 0x1b9   :  { %v1635_v23 = vpop.f32.mrf.mxu0  ;;  %v1657_v26 = vpop.f32.mrf.mxu1 }
 0x1ba   :  { %v1636_v25 = vadd.f32 %v1635_v23, %v1634_v19  ;;  %v1349_v31 = vadd.f32 %v1655_v28, %v1308_v24  ;;  %v1658_v35 = vadd.f32 %v1657_v26, %v1656_v21 }
 0x1bc   :  { %v1311_v32 = vadd.f32 %v1636_v25, %v1550_v22 }
 0x1be   :  { %v1352_v42 = vadd.f32 %v1658_v35, %v1311_v32 }
 0x1d3   :  { %v1675_v27 = vpop.f32.mrf.mxu0  ;;  %v1697_v29 = vpop.f32.mrf.mxu1 }
 0x1d5   :  { %v1676_v30 = vpop.f32.mrf.mxu0  ;;  %v1698_v34 = vpop.f32.mrf.mxu1 }
 0x1d6   :  { %v1677_v33 = vadd.f32 %v1676_v30, %v1675_v27  ;;  %v1699_v38 = vadd.f32 %v1698_v34, %v1697_v29 }
 0x1d7   :  { %v1678_v3 = vpop.f32.mrf.mxu0  ;;  %v1700_v39 = vpop.f32.mrf.mxu1 }
 0x1d8   :  { %v1390_v36 = vadd.f32 %v1677_v33, %v1349_v31 }
 0x1d9   :  { %v1679_v41 = vpop.f32.mrf.mxu0  ;;  %v1701_v45 = vpop.f32.mrf.mxu1 }
 0x1da   :  { %v1431_v43 = vadd.f32 %v1699_v38, %v1390_v36  ;;  %v1680_v44 = vadd.f32 %v1679_v41, %v1678_v3  ;;  %v1702_v47 = vadd.f32 %v1701_v45, %v1700_v39 }
 0x1dc   :  { %v1393_v46 = vadd.f32 %v1680_v44, %v1352_v42  ;;  %1469 = vperm.xlu1 %1706, %v1431_v43   ;;  %1437 = vadd.xlane.f32.xlu0 %v1431_v43 }
 0x1de   :  { %v1434_v48 = vadd.f32 %v1702_v47, %v1393_v46 }
 0x1e0   :  { %1474 = vperm.xlu1 %1706, %v1434_v48  }
 0x257   :  { %v1470_v59 = vpop.permute.xlu1 %1469 }
 0x25b   :  { %v1475_v37 = vpop.permute.xlu1 %1474 }
 0x265   :  { %v1438_v49 = vpop.xlane.xlu0 %1437 }
 0x266   :  { %v1446_v50 = vsub.f32 %v1438_v49, %v1431_v43 }
 0x268   :  { %v1448_v51 = vsel %vm1444_vm0, %v1446_v50, 0.0 }
 0x269   :  { %v1451_v52 = vsel %vm1450_vm1, %v1448_v51, 0.0 }
 0x26a   :  { %1454 = vadd.xlane.f32.xlu0 %v1451_v52 }
 0x2f3   :  { %v1455_v53 = vpop.xlane.xlu0 %1454 }
 0x2f4   :  { %v1456_v54 = vrot.slane %v1455_v53, 4 }
 0x2f6   :  { %v1457_v40 = vadd.f32 %v1456_v54, %v1455_v53 }
 0x2f8   :  { %v1458_v55 = vrot.slane %v1457_v40, 2 }
 0x2fa   :  { %v1459_v56 = vadd.f32 %v1458_v55, %v1457_v40 }
 0x2fc   :  { %v1460_v57 = vrot.slane %v1459_v56, 1 }
 0x2fe   :  { %v1461_v58 = vadd.f32 %v1460_v57, %v1459_v56 }
 0x300   :  { %1703 = vpush %v1461_v58 }
 0x331   :  { %s1704_s4 = spop %1703 }
 0x332   :  { %s1463_s14 = smul.f32 0.083333336, %s1704_s4 }
 0x334   :  { %v1464_v60 = vstv %s1463_s14 }
 0x335   :  { %v1465_v61 = vsub.f32 %v1431_v43, %v1464_v60  ;;  %v1466_v62 = vsub.f32 %v1434_v48, %v1464_v60 }
 0x337   :  { %v1477_v63 = vadd.f32 %v1470_v59, %v1465_v61  ;;  %v1478_v0 = vadd.f32 %v1475_v37, %v1466_v62 }
 0x339   :  { %1479 = vst [vmem:[%s2241_s5] sm:$0xff] %v1477_v63  ;;  %1480 = vst [vmem:[%s2241_s5 + $0x8] sm:$0xff] %v1478_v0 }

</bundles_post_ra>
